<compile_context>
chip_gen: v7x
topology: tpu7x:2x2x1
jax: 0.10.0
libtpu: 0.0.40
codegen_flags: <defaults>
</compile_context>

<pallas_src>
import functools
import math

import jax
import jax.numpy as jnp
from jax.experimental import pallas as pl
from jax.experimental.pallas import tpu as pltpu


def _round_up(x, m):
    return (x + m - 1) // m * m


def _sublane_rows(dtype):
    # Rows per packed sublane tile: 8 (f32), 16 (bf16), 32 (int8/fp8).
    return max(8, 32 // jnp.dtype(dtype).itemsize)


def _num_tensorcores():
    # v4/v5p (megacore) and v7x expose 2 TensorCores per device; v5e/v6e have 1.
    try:
        kind = jax.devices()[0].device_kind.lower()
    except Exception:
        return 1
    return 2 if any(t in kind for t in ("v4", "v5p", "v7")) else 1


def _vmem_cap_bytes():
    """Per-generation VMEM budget: ~75% of physical VMEM, leaving headroom for
    Mosaic internal scratch (≈96 MiB on v5e/v6e's 128 MiB, ≈48 MiB on v7x's 64 MiB)."""
    try:
        cap = int(pltpu.get_tpu_info().vmem_capacity_bytes)
    except Exception:
        cap = 64 << 20  # conservative fallback if the query is unavailable
    return (cap * 3) // 4


def _probe_copy_kernel(x_ref, o_ref):
    o_ref[...] = x_ref[...]


@functools.lru_cache(maxsize=1)
def _single_buffer_supported():
    """One-time probe (outside the hot path): does this Pallas/Mosaic build accept
    pipeline_mode=pl.Buffered(1) for a grid-invariant input?  The real launch is
    never wrapped in a broad except."""
    try:
        spec = pl.BlockSpec((8, 128), lambda i: (0, 0),
                            pipeline_mode=pl.Buffered(1))
        fn = pl.pallas_call(
            _probe_copy_kernel,
            out_shape=jax.ShapeDtypeStruct((8, 128), jnp.float32),
            grid=(2,),
            in_specs=[spec],
            out_specs=pl.BlockSpec((8, 128), lambda i: (0, 0)),
        )
        jax.block_until_ready(fn(jnp.zeros((8, 128), jnp.float32)))
        return True
    except Exception:  # probe only — narrow scope, cached forever
        return False


def _sine_layer_kernel(x_ref, w_ref, b_ref, o_ref, *, omega_0):
    # MXU matmul with f32 accumulation regardless of input dtype.
    y = jnp.dot(x_ref[...], w_ref[...], preferred_element_type=jnp.float32)
    y = y + b_ref[...].astype(jnp.float32)            # (tm, tn) + (1, tn) broadcast
    if omega_0 != 1.0:    # static Python branch; folded-omega params skip the mul
        y = y * jnp.float32(omega_0)
    o_ref[...] = jnp.sin(y).astype(o_ref.dtype)        # f32 epilogue, cast at store


def prepare_params(w_t, b, omega_0=1.0, lane_multiple=128):
    """One-time parameter transform for the fast path:
      * fold omega:  sin(omega*(x@w + b)) == sin(x@(omega*w) + omega*b)
      * pad out_features up to a lane multiple so the forward does no per-call
        padding and the kernel's output stores are full-width (lane-dense).
    Returns (w_padded, b_padded, valid_out_features)."""
    w_t = jnp.asarray(w_t)
    b = jnp.reshape(jnp.asarray(b), (1, -1))
    n = w_t.shape[1]
    if omega_0 != 1.0:
        w_t = w_t * omega_0
        b = b * omega_0
    n_pad = _round_up(n, lane_multiple)
    if n_pad != n:
        w_t = jnp.pad(w_t, ((0, 0), (0, n_pad - n)))
        b = jnp.pad(b, ((0, 0), (0, n_pad - n)))
    return w_t, b, n


def sine_layer_forward(x, w_t, b, omega_0=1.0, *, tm=1024):
    """Compute sin(omega_0 * (x @ w_t + b)).

    x:   (M, in_features)                       f32 or bf16
    w_t: (in_features, out_features)            PyTorch nn.Linear weight, transposed
    b:   (out_features,) or (1, out_features)

    Fast path: pass params from prepare_params (omega folded, columns padded to a
    multiple of 128) and keep omega_0=1.0 — then there is no per-call pad and no
    output slice.  Otherwise the wrapper pads/slices for exact module semantics.
    """
    M, K = x.shape
    K2, N = w_t.shape
    assert K == K2, (K, K2)
    b = jnp.reshape(b, (1, -1))
    assert b.shape[1] == N, (b.shape, N)

    x_item = jnp.dtype(x.dtype).itemsize
    w_item = jnp.dtype(w_t.dtype).itemsize

    # ---- lane-dense output width (compat pad only if params weren't pre-padded).
    Np = _round_up(N, 128)
    trim_cols = Np != N
    if trim_cols:
        w_t = jnp.pad(w_t, ((0, 0), (0, Np - N)))
        b = jnp.pad(b, ((0, 0), (0, Np - N)))

    # ---- out_features tiling: keep the resident weight block modest so large
    # layers fit v7x's smaller VMEM without shrinking the row tile.
    if K * Np * w_item > (8 << 20):
        tn = next(c for c in (512, 256, 128) if Np % c == 0)
    else:
        tn = Np
    grid_n = Np // tn

    # ---- row tile: dtype-aligned sublanes, no batch padding (cdiv grid; the
    # partial last block's out-of-bounds stores are masked by Pallas).
    sub = _sublane_rows(x.dtype)
    tm = _round_up(min(max(tm, sub), _round_up(M, sub)), sub)
    n_tc = _num_tensorcores()
    grid_m = pl.cdiv(M, tm)
    if n_tc > 1 and M > sub and grid_m % n_tc != 0:
        # Balance row blocks across the TensorCores (even step count on 2-TC parts).
        grid_m = max(n_tc, _round_up(grid_m, n_tc))
        tm = _round_up(pl.cdiv(M, grid_m), sub)
        grid_m = pl.cdiv(M, tm)

    # ---- per-generation VMEM budget; shrink tm (not the limit) if it won't fit.
    cap = _vmem_cap_bytes()
    invariant = (grid_n == 1) and _single_buffer_supported()
    param_bufs = 1 if invariant else 2

    def est(tm_):
        return (2 * tm_ * K * x_item           # x tile, double buffered
                + 2 * tm_ * tn * x_item        # out tile, double buffered
                + param_bufs * (K * tn * w_item + tn * 4)
                + (4 << 20))                   # Mosaic/pipeline headroom

    while est(tm) > cap and tm > 2 * sub:
        tm = _round_up(max(sub, tm // 2), sub)
    grid_m = pl.cdiv(M, tm)
    vmem_limit = int(min(max(est(tm), 16 << 20), cap))

    def param_spec(block_shape, index_map):
        if invariant:
            return pl.BlockSpec(block_shape, index_map,
                                pipeline_mode=pl.Buffered(1))
        return pl.BlockSpec(block_shape, index_map)

    cost = pl.CostEstimate(
        flops=2 * M * K * Np,
        transcendentals=M * Np,
        bytes_accessed=(M * K * x_item + K * Np * w_item
                        + Np * jnp.dtype(b.dtype).itemsize + M * Np * x_item),
    )

    kernel = functools.partial(_sine_layer_kernel, omega_0=float(omega_0))

    out = pl.pallas_call(
        kernel,
        out_shape=jax.ShapeDtypeStruct((M, Np), x.dtype),
        grid_spec=pltpu.PrefetchScalarGridSpec(
            num_scalar_prefetch=0,
            grid=(grid_m, grid_n),
            in_specs=[
                pl.BlockSpec((tm, K), lambda i, j: (i, 0)),   # x row tile
                param_spec((K, tn), lambda i, j: (0, j)),     # weight column block
                param_spec((1, tn), lambda i, j: (0, j)),     # bias row
            ],
            out_specs=pl.BlockSpec((tm, tn), lambda i, j: (i, j)),
        ),
        compiler_params=pltpu.CompilerParams(
            dimension_semantics=("parallel", "parallel"),
            vmem_limit_bytes=vmem_limit,
        ),
        cost_estimate=cost,
    )(x, w_t, b)

    return out[:, :N] if trim_cols else out


def init_sine_layer_params(key, in_features, out_features, is_first=False,
                           omega_0=30.0, dtype=jnp.float32):
    """Deterministic init matching SineLayer.init_weights (SIREN scheme)."""
    k_w, k_b = jax.random.split(key)
    if is_first:
        bound_w = 1.0 / in_features
    else:
        bound_w = math.sqrt(6.0 / in_features) / omega_0
    # PyTorch weight is (out, in); store transposed (in, out) for the kernel.
    w_t = jax.random.uniform(k_w, (in_features, out_features),
                             minval=-bound_w, maxval=bound_w, dtype=dtype)
    # nn.Linear default bias init: U(-1/sqrt(in), 1/sqrt(in))
    bound_b = 1.0 / math.sqrt(in_features)
    b = jax.random.uniform(k_b, (1, out_features),
                           minval=-bound_b, maxval=bound_b, dtype=dtype)
    return w_t, b


if __name__ == "__main__":
    key = jax.random.PRNGKey(0)
    k_x, k_p = jax.random.split(key)

    batch = 132           # NOT tile-divisible -> exercises masked edge-block stores
    in_features = 32
    out_features = 48     # NOT a multiple of 128 -> exercises lane padding path
    omega_0 = 30.0

    x = jax.random.uniform(k_x, (batch, in_features),
                           minval=-1.0, maxval=1.0, dtype=jnp.float32)
    w_t, b = init_sine_layer_params(k_p, in_features, out_features,
                                    is_first=True, omega_0=omega_0)

    # Reference (module semantics): sin(omega_0 * (x @ W^T + b))
    ref = jnp.sin(omega_0 * (x @ w_t + b))

    # Path A: module semantics verbatim (omega in the kernel epilogue); a small
    # explicit tile forces a multi-step grid with a partial last row block.
    out_a = jax.block_until_ready(
        sine_layer_forward(x, w_t, b, omega_0=omega_0, tm=64))
    assert out_a.shape == (batch, out_features)
    assert jnp.allclose(out_a, ref, atol=1e-5, rtol=1e-5)

    # Path B (recommended): omega folded + columns pre-padded once, so the
    # forward does no per-call pad and no output slice (consumer accepts Np).
    w_p, b_p, n_valid = prepare_params(w_t, b, omega_0)
    out_b = jax.block_until_ready(sine_layer_forward(x, w_p, b_p))
    assert out_b.shape[0] == batch and out_b.shape[1] % 128 == 0
    assert jnp.allclose(out_b[:, :n_valid], ref, atol=1e-4, rtol=1e-4)

    # Path C: bf16 activations/weights (f32 MXU accumulation + f32 sin inside,
    # cast at store).  Compare against the bf16-quantized-input reference.
    xb = x.astype(jnp.bfloat16)
    wb = w_p.astype(jnp.bfloat16)
    ref_c = jnp.sin(xb.astype(jnp.float32) @ wb.astype(jnp.float32) + b_p)
    out_c = jax.block_until_ready(sine_layer_forward(xb, wb, b_p))
    assert jnp.allclose(out_c[:, :n_valid].astype(jnp.float32),
                        ref_c[:, :n_valid], atol=2e-2)

    print("KERNEL_OK")
</pallas_src>

<mosaic_0001>
module attributes {stable_mosaic.version = 11 : i64} {
  func.func @_probe_copy_kernel(%arg0: i32, %arg1: memref<8x128xf32, #tpu.memory_space<vmem>>, %arg2: memref<8x128xf32, #tpu.memory_space<vmem>>) attributes {dimension_semantics = [#tpu.dimension_semantics<arbitrary>], iteration_bounds = array<i64: 2>, scalar_prefetch = 0 : i64, scratch_operands = 0 : i64, tpu.core_type = #tpu.core_type<tc>, window_params = [{pipeline_mode = #tpu.pipeline_mode<synchronous>, transform_indices = @transform_0, window_bounds = array<i64: 8, 128>}, {pipeline_mode = #tpu.pipeline_mode<synchronous>, transform_indices = @transform_1, window_bounds = array<i64: 8, 128>}]} {
    %c0 = arith.constant 0 : index
    %c0_0 = arith.constant 0 : index
    %0 = vector.load %arg1[%c0, %c0_0] : memref<8x128xf32, #tpu.memory_space<vmem>>, vector<8x128xf32>
    %c0_1 = arith.constant 0 : index
    %c0_2 = arith.constant 0 : index
    %1 = vector.load %arg2[%c0_1, %c0_2] : memref<8x128xf32, #tpu.memory_space<vmem>>, vector<8x128xf32>
    tpu.vector_store %arg2[%c0_1, %c0_2], %0 {strides = array<i32>} : memref<8x128xf32, #tpu.memory_space<vmem>>, vector<8x128xf32>,
    return
  }
  func.func @transform_0(%arg0: i32) -> (i32, i32) {
    %c0_i32 = arith.constant 0 : i32
    %c0_i32_0 = arith.constant 0 : i32
    %c0_i32_1 = arith.constant 0 : i32
    return %c0_i32, %c0_i32_0 : i32, i32
  }
  func.func @transform_1(%arg0: i32) -> (i32, i32) {
    %c0_i32 = arith.constant 0 : i32
    %c0_i32_0 = arith.constant 0 : i32
    %c0_i32_1 = arith.constant 0 : i32
    return %c0_i32, %c0_i32_0 : i32, i32
  }
}

module attributes {stable_mosaic.version = 11 : i64} {
  func.func @_sine_layer_kernel(%arg0: i32, %arg1: i32, %arg2: memref<64x32xf32, #tpu.memory_space<vmem>>, %arg3: memref<32x128xf32, #tpu.memory_space<vmem>>, %arg4: memref<1x128xf32, #tpu.memory_space<vmem>>, %arg5: memref<64x128xf32, #tpu.memory_space<vmem>>) attributes {dimension_semantics = [#tpu.dimension_semantics<parallel>, #tpu.dimension_semantics<parallel>], iteration_bounds = array<i64: 3, 1>, scalar_prefetch = 0 : i64, scratch_operands = 0 : i64, tpu.core_type = #tpu.core_type<tc>, window_params = [{transform_indices = @transform_0, window_bounds = array<i64: 64, 32>}, {transform_indices = @transform_1, window_bounds = array<i64: 32, 128>}, {transform_indices = @transform_2, window_bounds = array<i64: 1, 128>}, {transform_indices = @transform_3, window_bounds = array<i64: 64, 128>}]} {
    %c0 = arith.constant 0 : index
    %c0_0 = arith.constant 0 : index
    %0 = vector.load %arg2[%c0, %c0_0] : memref<64x32xf32, #tpu.memory_space<vmem>>, vector<64x32xf32>
    %c0_1 = arith.constant 0 : index
    %c0_2 = arith.constant 0 : index
    %1 = vector.load %arg3[%c0_1, %c0_2] : memref<32x128xf32, #tpu.memory_space<vmem>>, vector<32x128xf32>
    %cst = arith.constant dense<0.000000e+00> : vector<64x128xf32>
    %2 = tpu.matmul %0, %1, %cst {dimension_numbers = #tpu.dot_dimension_numbers<[1], [0], [0], [1], [0, 0, 1, 1], [], []>} : vector<64x32xf32>, vector<32x128xf32>, vector<64x128xf32> -> vector<64x128xf32>
    %c0_3 = arith.constant 0 : index
    %c0_4 = arith.constant 0 : index
    %3 = vector.load %arg4[%c0_3, %c0_4] : memref<1x128xf32, #tpu.memory_space<vmem>>, vector<1x128xf32>
    %4 = vector.broadcast %3 : vector<1x128xf32> to vector<64x128xf32>
    %5 = arith.addf %2, %4 : vector<64x128xf32>
    %cst_5 = arith.constant 3.000000e+01 : f32
    %6 = vector.broadcast %cst_5 : f32 to vector<64x128xf32>
    %7 = arith.mulf %5, %6 : vector<64x128xf32>
    %8 = math.sin %7 : vector<64x128xf32>
    %c0_6 = arith.constant 0 : index
    %c0_7 = arith.constant 0 : index
    %9 = vector.load %arg5[%c0_6, %c0_7] : memref<64x128xf32, #tpu.memory_space<vmem>>, vector<64x128xf32>
    tpu.vector_store %arg5[%c0_6, %c0_7], %8 {strides = array<i32>} : memref<64x128xf32, #tpu.memory_space<vmem>>, vector<64x128xf32>,
    return
  }
  func.func @transform_0(%arg0: i32, %arg1: i32) -> (i32, i32) {
    %c0_i32 = arith.constant 0 : i32
    %c0_i32_0 = arith.constant 0 : i32
    return %arg0, %c0_i32 : i32, i32
  }
  func.func @transform_1(%arg0: i32, %arg1: i32) -> (i32, i32) {
    %c0_i32 = arith.constant 0 : i32
    %c0_i32_0 = arith.constant 0 : i32
    return %c0_i32, %arg1 : i32, i32
  }
  func.func @transform_2(%arg0: i32, %arg1: i32) -> (i32, i32) {
    %c0_i32 = arith.constant 0 : i32
    %c0_i32_0 = arith.constant 0 : i32
    return %c0_i32, %arg1 : i32, i32
  }
  func.func @transform_3(%arg0: i32, %arg1: i32) -> (i32, i32) {
    %c0_i32 = arith.constant 0 : i32
    return %arg0, %arg1 : i32, i32
  }
}

</mosaic_0001>

<bundles_post_ra>
// kernel: tpu_custom_call.1
= control target key start
LH: loop header
LB: loop body
LE: loop exit
PB: predicated region body
PF: predicated region fallthrough
CT: control target
= control target key end

     0   :  { %6 = vsyncpa [#allocation3], 0  ;;  %s340_s0 = inlined_call_operand.hbm [shape: f32[8,128], index: 0, kind: input, shape index: {}]   ;;  %s341_s1 = inlined_call_operand.hbm [shape: f32[8,128], index: 1, kind: output, shape index: {}]  }
   0x1   :  { %7 = vsyncpa [#allocation4], 0  ;;  %s261_s6 = smov 0  }
   0x2 LB: > { %s144_s7 = sadd.s32 4294967295, %s247_s6   ;;  %p145_p0 = scmp.ge.s32.totalorder %s247_s6, 1  ;;  %s247_s6 = sphi %s261_s6, %s13_s6  }
   0x3   : > { %p60_p1 = scmp.lt.s32.totalorder %s247_s6, 3  ;;  %p275_p3 = scmp.eq.s32.totalorder %s144_s7, 0 }
   0x4   : > { %s249_s10 = smov [#allocation2]   ;;  %s179_s15 = scalar_lea.hbm %s340_s0, 128 }
   0x5   : > { %p269_p2 = pnand %p145_p0, %p60_p1  ;;  %s73_s11 = sshll.u32 %s249_s10, 4  ;;  %s74_s11 = int_to_ptr.vmem [resolvable:$true] %s73_s11 }
   0x6   : > { %s346_s9 = scalar_select %p275_p3, 1, 0 }
   0x7   : > { %s345_s8 = scalar_select %p269_p2, 1, 0 }
   0x8   : > { %p161_p4 = pneg %p269_p2  ;;  %p180_p6 = scmp.ne.s32.totalorder %s340_s0, %s179_s15 }
   0x9   : > { %p186_p10 = scmp.lt.u32.totalorder %s179_s15, %s340_s0 }
   0xa   : > { %p283_p5 = pnand %p275_p3, %p161_p4 }
   0xc   : > { %p181_p7 = pneg %p283_p5 }
   0xe   : > { %p182_p8 = pnand %p181_p7, %p180_p6 }
  0x10   : > { %p183_p9 = pneg %p182_p8 }
  0x12   : > { %p188_p11 = pnand %p186_p10, %p183_p9 }
  0x14   : > { %191 = shalt.err (!%p188_p11)
}
  0x15   : > { %s192_s20 = scalar_lea.vmem %s74_s11, 128  ;;  %p200_p1 = scmp.lt.s32.totalorder %s74_s11, %s74_s11 }
  0x16   : > { %p193_p12 = scmp.ne.s32.totalorder %s74_s11, %s192_s20  ;;  %p201_p4 = scmp.lt.s32.totalorder %s192_s20, %s192_s20 }
  0x18   : > { %p195_p13 = pnand %p193_p12, %p181_p7  ;;  %p202_p3 = por %p201_p4, %p200_p1 }
  0x1a   : > { %p196_p0 = pneg %p195_p13 }
  0x1c   : > { %p203_p2 = pnand %p202_p3, %p196_p0 }
  0x1e   : > { %206 = shalt.err (!%p203_p2)
}
  0x1f   : > { %164 = dma.hbm_to_vmem [thread:$0]  (!%p283_p5), %s340_s0, 128, %s74_s11, [#allocation3]  }
  0x20   : > { %p348_p6 = scmp.ne.s32.totalorder %s345_s8, 0 }
  0x21   : > { %p349_p8 = scmp.ne.s32.totalorder (!%p348_p6), %s346_s9, 0 }
  0x22   : > { %86 = sbr.rel (%p348_p6) target bundleno = 67 (0x43), region = 24 }
  0x29   : > { %238 = dma.done.wait (%p349_p8), [#allocation3], 128  }
  0x2a   : > { %240 = vsyncadd (%p349_p8), [#allocation3], 4294967168  ;;  %s250_s23 = smov [#allocation5]   ;;  %p311_p2 = scmp.eq.s32.totalorder %s144_s7, 1  ;;  %v96_v0 = vld [vmem:[#allocation2] sm:$0xff] }
  0x2b   : > { %s105_s24 = sshll.u32 %s250_s23, 4  ;;  %97 = vst [vmem:[#allocation5] sm:$0xff] %v96_v0  ;;  %s106_s24 = int_to_ptr.vmem [resolvable:$true] %s105_s24 }
  0x2c   : > { %s207_s26 = scalar_lea.vmem %s106_s24, 128  ;;  %p214_p9 = scmp.lt.s32.totalorder %s106_s24, %s106_s24 }
  0x2d   : > { %p208_p3 = scmp.ne.s32.totalorder %s106_s24, %s207_s26  ;;  %p215_p10 = scmp.lt.s32.totalorder %s207_s26, %s207_s26 }
  0x2f   : > { %p209_p5 = pnand %p208_p3, %p311_p2  ;;  %p216_p11 = por %p215_p10, %p214_p9 }
  0x31   : > { %p210_p7 = pneg %p209_p5 }
  0x33   : > { %p217_p12 = pnand %p216_p11, %p210_p7 }
  0x35   : > { %220 = shalt.err (!%p217_p12)
}
  0x36   : > { %s221_s29 = scalar_lea.hbm %s341_s1, 128 }
  0x37   : > { %p222_p13 = scmp.ne.s32.totalorder %s341_s1, %s221_s29  ;;  %p227_p4 = scmp.lt.u32.totalorder %s221_s29, %s341_s1 }
  0x39   : > { %p223_p0 = pnand %p222_p13, %p311_p2 }
  0x3b   : > { %p224_p1 = pneg %p223_p0 }
  0x3d   : > { %p229_p6 = pnand %p227_p4, %p224_p1 }
  0x3f   : > { %232 = shalt.err (!%p229_p6)
}
  0x40   : > { %158 = dma.vmem_to_hbm [thread:$0]  (%p311_p2), %s106_s24, 128, %s341_s1, [#allocation4]  }
  0x41   : > { %242 = dma.done.wait (%p311_p2), [#allocation4], 128  }
  0x42   : > { %244 = vsyncadd (%p311_p2), [#allocation4], 4294967168 }
  0x43 PF: > { %s13_s6 = sadd.s32 1, %s247_s6  }
  0x44   : > { %p10_p8 = scmp.ge.s32.totalorder %s13_s6, 4  }
  0x46   :  { %12 = sbr.rel (!%p10_p8) target bundleno = 2 (0x2), region = 53 }
  0x4d   :  { %118 = vsyncpa [#allocation3], 1 }
  0x4e   :  { %120 = vsyncpa [#allocation3 + $0x1], 1 }
  0x4f   :  { %121 = vsyncpa [#allocation4], 1 }
  0x50   :  { %123 = vsyncpa [#allocation4 + $0x1], 1 }

// kernel: tpu_custom_call.1
= control target key start
LH: loop header
LB: loop body
LE: loop exit
PB: predicated region body
PF: predicated region fallthrough
CT: control target
= control target key end

     0   :  { %8 = vsyncpa [#allocation3], 0  ;;  %s2535_s0 = inlined_call_operand.vmem [shape: f32[132,32], index: 0, kind: input, shape index: {}]   ;;  %s2536_s1 = inlined_call_operand.vmem [shape: f32[32,128], index: 1, kind: input, shape index: {}]   ;;  %s2537_s2 = inlined_call_operand.vmem [shape: f32[1,128], index: 2, kind: input, shape index: {}]   ;;  %s2538_s3 = inlined_call_operand.hbm [shape: f32[132,128], index: 3, kind: output, shape index: {}]  }
   0x1   :  { %10 = vsyncpa [#allocation3 + $0x1], 0  ;;  %s1699_s12 = smov 0   ;;  %s1701_s13 = smov 0  }
   0x2   :  { %s1703_s14 = smov 0   ;;  %s1705_s15 = smov 0  }
   0x3   :  { %s1707_s16 = smov 0   ;;  %s1709_s17 = smov 0  }
   0x4 LB: > { %s1358_s18 = sadd.s32 4294967295, %s1668_s17   ;;  %s1359_s19 = sadd.s32 4294967294, %s1668_s17   ;;  %s1668_s17 = sphi %s1709_s17, %s16_s17   ;;  %s1664_s16 = sphi %s1707_s16, %s2557_s16   ;;  %s1660_s15 = sphi %s1705_s15, %s2556_s15   ;;  %s1656_s14 = sphi %s1703_s14, %s2555_s14   ;;  %s1652_s13 = sphi %s1701_s13, %s2554_s13   ;;  %s1648_s12 = sphi %s1699_s12, %s2553_s12  }
   0x5   : > { %s28_s20 = sadd.s32 1, %s1664_s16  ;;  %s115_s21 = sadd.s32 1, %s1656_s14 }
   0x6   : > { %p30_p0 = scmp.ge.s32.totalorder %s28_s20, 3  ;;  %p125_p1 = scmp.ne.s32.totalorder %s1656_s14, %s1652_s13 }
   0x7   : > { %p126_p2 = scmp.eq.s32.totalorder %s1358_s18, 2  ;;  %p131_p3 = scmp.ne.s32.totalorder %s1652_s13, %s1648_s12 }
   0x8   : > { %s2559_s20 = smov (%p30_p0, %s28_s20), 0  ;;  %p132_p5 = scmp.eq.s32.totalorder %s1359_s19, 2 }
   0x9   : > { %p1739_p4 = por %p126_p2, %p125_p1  ;;  %s110_s23 = ssub.s32 %s1664_s16, %s2559_s20 }
   0xa   : > { %p1364_p6 = scmp.ge.s32.totalorder %s1668_s17, 1  ;;  %p113_p7 = scmp.eq.s32.totalorder %s110_s23, 0 }
   0xb   : > { %p1746_p8 = por %p132_p5, %p131_p3  ;;  %p180_p9 = scmp.lt.s32.totalorder %s1668_s17, 4 }
   0xc   : > { %s1752_s25 = scalar_select %p113_p7, %s1656_s14, %s115_s21  }
   0xd   : > { %p181_p10 = pnand %p1364_p6, %p180_p9 }
   0xe   : > { %v249_v0 = vld [vmem:[%s2536_s1] sm:$0xff] (!%p181_p10)  ;;  %v250_v1 = vld [vmem:[%s2536_s1 + $0x8] sm:$0xff] (!%p181_p10)  ;;  %v251_v2 = vld [vmem:[%s2536_s1 + $0x10] sm:$0xff] (!%p181_p10)  ;;  %s1764_s5 = sshll.u32 (!%p181_p10), %s1660_s15, 3  ;;  %vm260_vm0 = vcmask (!%p181_p10), 261120   ;;  %s212_s19 = sand.u32 (!%p181_p10), 1, %s1652_s13  }
   0xf   : > { %184 = sbr.rel (%p181_p10) target bundleno = 508 (0x1fc), region = 32  ;;  %v1451_v3 = vpack.c.bf16 (!%p181_p10), %v250_v1, %v249_v0  ;;  %v252_v4 = vld [vmem:[%s2536_s1 + $0x18] sm:$0xff] (!%p181_p10)  ;;  %p220_p11 = scmp.lt.s32.totalorder (!%p181_p10), %s1764_s5, 16  ;;  %v1786_v14 = vld [vmem:[%s2537_s2] ss:$0 sm:$0xff] (!%p181_p10) }
  0x10   : > { %v1455_v5 = vpack.c.bf16 (!%p181_p10), %v252_v4, %v251_v2  ;;  %v1670_v58 = vmov (!%p181_p10), 683565275   ;;  %v1671_v62 = vmov (!%p181_p10), 2475754826   ;;  %v1672_v0 = vmov (!%p181_p10), 2131351028  }
  0x11   : > { %1452 = vmatprep.subr.bf16.mxu0 (!%p181_p10), %v1451_v3  ;;  %1459 = vmatprep.subr.bf16.mxu1 (!%p181_p10), %v1451_v3  ;;  %v1673_v2 = vmov (!%p181_p10), 2102212464   ;;  %v1674_v4 = vmov (!%p181_p10), 920167782   ;;  %s1365_s26 = sshll.u32 (!%p181_p10), %s212_s19, 6  ;;  %s2469_s30 = scalar_lea.sflag (!%p181_p10), [#allocation3], %s212_s19 }
  0x12   : > { %1454 = vmatpush3.bf16.msra.mxu0 (!%p181_p10), %v1451_v3  ;;  %1461 = vmatpush3.bf16.msra.mxu1 (!%p181_p10), %v1451_v3  ;;  %s2104_s27 = scalar_lea.vmem (!%p181_p10), [#allocation2], %s1365_s26 }
  0x13   : > { %1456 = vmatprep.subr.bf16.mxu0 (!%p181_p10), %v1455_v5  ;;  %1460 = vmatprep.subr.bf16.mxu1 (!%p181_p10), %v1455_v5 }
  0x16   : > { %s221_s8 = scalar_select %p220_p11, %s1764_s5, 16  ;;  %1458 = vmatpush3.bf16.msra.mxu0 %v1455_v5  ;;  %1462 = vmatpush3.bf16.msra.mxu1 %v1455_v5 }
  0x17   : > { %s1247_s4 = ssub.s32 (%p1739_p4), 17, %s1764_s5 }
  0x18   : > { %s1367_s9 = sshll.u32 %s221_s8, 3  ;;  %p1248_p12 = scmp.lt.s32.totalorder (%p1739_p4), %s1247_s4, 8 }
  0x19   : > { %s223_s18 = scalar_lea.vmem %s2535_s0, %s1367_s9 }
  0x1a   : > { %v241_v6 = vld [vmem:[%s223_s18] sm:$0xff]  ;;  %v242_v8 = vld [vmem:[%s223_s18 + $0x8] sm:$0xff]  ;;  %v243_v10 = vld [vmem:[%s223_s18 + $0x10] sm:$0xff] }
  0x1b   : > { %v245_v7 = vld [vmem:[%s223_s18 + $0x20] sm:$0xff]  ;;  %v246_v9 = vld [vmem:[%s223_s18 + $0x28] sm:$0xff]  ;;  %1439 = vmatprep.mubr.msk.f32.mxu0 %vm260_vm0, %v241_v6  ;;  %v247_v11 = vld [vmem:[%s223_s18 + $0x30] sm:$0xff] }
  0x1c   : > { %1445 = vmatprep.mubr.msk.f32.mxu1 %vm260_vm0, %v245_v7  ;;  %1440 = vmatmul.mubr.msk.f32.vlgmr.msra.gmra.mrb[0].mxu0 %vm260_vm0, %v242_v8  ;;  %v244_v12 = vld [vmem:[%s223_s18 + $0x18] sm:$0xff] }
  0x1d   : > { %1446 = vmatmul.mubr.msk.f32.vlgmr.msra.gmra.mrb[0].mxu1 %vm260_vm0, %v246_v9  ;;  %1442 = vmatprep.mubr.msk.f32.mxu0 %vm260_vm0, %v243_v10  ;;  %v248_v13 = vld [vmem:[%s223_s18 + $0x38] sm:$0xff] }
  0x1e   : > { %1448 = vmatprep.mubr.msk.f32.mxu1 %vm260_vm0, %v247_v11  ;;  %v1675_v11 = vmov 1326507024  }
  0x20   : > { %1443 = vmatmul.mubr.msk.f32.gmra.mrb[2].mxu0 %vm260_vm0, %v244_v12 }
  0x21   : > { %1449 = vmatmul.mubr.msk.f32.gmra.mrb[2].mxu1 %vm260_vm0, %v248_v13 }
  0xef   : > { %v1441_v15 = vpop.f32.mrb[0].mxu0 }
  0xf0   : > { %v1447_v16 = vpop.f32.mrb[0].mxu1  ;;  %v357_v17 = vadd.f32 %v1441_v15, %v1786_v14  ;;  %v351_v19 = vpop.f32.mrb[1].mxu0 }
  0xf1   : > { %v377_v18 = vadd.f32 %v1447_v16, %v1786_v14  ;;  %v371_v20 = vpop.f32.mrb[1].mxu1  ;;  %v352_v21 = vadd.f32 %v1786_v14, %v351_v19 }
  0xf2   : > { %v1791_v22 = vmul.f32 30.0, %v357_v17  ;;  %v372_v42 = vadd.f32 %v1786_v14, %v371_v20 }
  0xf3   : > { %v1793_v23 = vmul.f32 30.0, %v377_v18  ;;  %v1795_v24 = vmul.f32 30.0, %v352_v21  ;;  %v1797_v25 = vpop.f32.mrb[2].mxu0 }
  0xf4   : > { %v1799_v26 = vpop.f32.mrb[2].mxu1  ;;  %v502_v27 = vand.u32 2147483647, %v1791_v22  ;;  %v505_v28 = vand.u32 2139095040, %v1791_v22  ;;  %v1803_v29 = vpop.f32.mrb[3].mxu0  ;;  %v1816_v52 = vmul.f32 30.0, %v372_v42 }
  0xf5   : > { %v918_v30 = vand.u32 2147483647, %v1793_v23  ;;  %v921_v31 = vand.u32 2139095040, %v1793_v23  ;;  %v401_v36 = vand.u32 2139095040, %v1795_v24  ;;  %v398_v45 = vand.u32 2147483647, %v1795_v24 }
  0xf6   : > { %v506_v32 = vshrl.u32 %v505_v28, 23  ;;  %v509_v33 = vand.u32 8388607, %v502_v27  ;;  %v1814_v47 = vpop.f32.mrb[3].mxu1  ;;  %vm1899_vm13 = vcmp.le.f32.partialorder %v502_v27, 0.7853982 }
  0xf7   : > { %v922_v34 = vshrl.u32 %v921_v31, 23  ;;  %v925_v35 = vand.u32 8388607, %v918_v30  ;;  %v402_v39 = vshrl.u32 %v401_v36, 23  ;;  %v1824_v55 = vand.u32 8388607, %v398_v45 }
  0xf8   : > { %v1381_v37 = vadd.s32 4294967169, %v506_v32  ;;  %v510_v40 = vor.u32 8388608, %v509_v33  ;;  %vm504_vm14 = vcmp.lt.s32.totalorder %v1791_v22, 0 }
  0xf9   : > { %v1397_v38 = vadd.s32 4294967169, %v922_v34  ;;  %v926_v43 = vor.u32 8388608, %v925_v35  ;;  %v1377_v46 = vadd.s32 4294967169, %v402_v39 }
  0xfa   : > { %v512_v41 = vadd.s32 1, %v1381_v37  ;;  %v1818_v53 = vshll.u32 %v510_v40, 8 }
  0xfb   : > { %v928_v44 = vadd.s32 1, %v1397_v38  ;;  %v1820_v54 = vshll.u32 %v926_v43, 8  ;;  %v1826_v56 = vadd.s32 1, %v1377_v46 }
  0xfc   : > { %vm513_vm1 = vcmp.gt.s32.totalorder %v512_v41, 0 }
  0xfd   : > { %v514_v48 = vsel %vm513_vm1, %v512_v41, 0  ;;  %vm929_vm2 = vcmp.gt.s32.totalorder %v928_v44, 0  ;;  %vm409_vm7 = vcmp.gt.s32.totalorder %v1826_v56, 0 }
  0xfe   : > { %v515_v49 = vshrl.u32 %v514_v48, 5  ;;  %v516_v50 = vand.u32 31, %v514_v48  ;;  %v930_v51 = vsel %vm929_vm2, %v928_v44, 0 }
  0xff   : > { %v1829_v60 = vshrl.u32 %v930_v51, 5  ;;  %v932_v61 = vand.u32 31, %v930_v51 }
 0x100   : > { %v517_v57 = vsub.s32 32, %v516_v50  ;;  %v519_v59 = vshll.u32 %v1670_v58, %v516_v50  ;;  %v522_v63 = vshll.u32 %v1671_v62, %v516_v50  ;;  %v525_v1 = vshll.u32 %v1672_v0, %v516_v50 }
 0x101   : > { %v528_v3 = vshll.u32 %v1673_v2, %v516_v50  ;;  %v531_v5 = vshll.u32 %v1674_v4, %v516_v50  ;;  %vm534_vm3 = vcmp.lt.s32.totalorder %v515_v49, 1  ;;  %vm535_vm4 = vcmp.lt.s32.totalorder %v515_v49, 2 }
 0x102   : > { %v520_v6 = vshrl.u32 %v1671_v62, %v517_v57  ;;  %v523_v7 = vshrl.u32 %v1672_v0, %v517_v57  ;;  %v526_v8 = vshrl.u32 %v1673_v2, %v517_v57  ;;  %v518_v9 = vshrl.u32 %v1670_v58, %v517_v57 }
 0x103   : > { %v529_v10 = vshrl.u32 %v1674_v4, %v517_v57  ;;  %v532_v12 = vshrl.u32 %v1675_v11, %v517_v57  ;;  %v933_v17 = vsub.s32 32, %v932_v61  ;;  %vm536_vm5 = vcmp.lt.s32.totalorder %v515_v49, 3 }
 0x104   : > { %v521_v13 = vor.u32 %v520_v6, %v519_v59  ;;  %v524_v15 = vor.u32 %v523_v7, %v522_v63  ;;  %v527_v16 = vor.u32 %v526_v8, %v525_v1  ;;  %vm537_vm6 = vcmp.lt.s32.totalorder %v515_v49, 4 }
 0x105   : > { %v530_v18 = vor.u32 %v529_v10, %v528_v3  ;;  %v533_v19 = vor.u32 %v532_v12, %v531_v5  ;;  %v935_v35 = vshll.u32 %v1670_v58, %v932_v61  ;;  %v936_v38 = vshrl.u32 %v1671_v62, %v933_v17 }
 0x106   : > { %v538_v20 = vsel %vm534_vm3, %v518_v9, %v521_v13  ;;  %v539_v21 = vsel %vm537_vm6, %v527_v16, 2102212464  ;;  %v542_v28 = vsel %vm534_vm3, %v521_v13, %v524_v15  ;;  %v546_v31 = vsel %vm534_vm3, %v524_v15, %v527_v16 }
 0x107   : > { %v540_v32 = vsel %vm536_vm5, %v524_v15, %v539_v21  ;;  %v543_v33 = vsel %vm537_vm6, %v530_v18, 920167782  ;;  %v547_v34 = vsel %vm537_vm6, %v533_v19, 1326507024  ;;  %v938_v39 = vshll.u32 %v1671_v62, %v932_v61 }
 0x108   : > { %v544_v36 = vsel %vm536_vm5, %v527_v16, %v543_v33  ;;  %v548_v37 = vsel %vm536_vm5, %v530_v18, %v547_v34  ;;  %v541_v40 = vsel %vm535_vm4, %v538_v20, %v540_v32  ;;  %v939_v43 = vshrl.u32 %v1672_v0, %v933_v17 }
 0x109   : > { %v545_v41 = vsel %vm535_vm4, %v542_v28, %v544_v36  ;;  %v549_v42 = vsel %vm535_vm4, %v546_v31, %v548_v37  ;;  %v937_v51 = vor.u32 %v936_v38, %v935_v35  ;;  %v941_v59 = vshll.u32 %v1672_v0, %v932_v61 }
 0x10a   : > { %v1853_v44 = vmul.u32.u64.low %v1818_v53, %v549_v42  ;;  %v1854_v46 = vmul.u32.u64.high %v1818_v53, %v549_v42, %v1853_v44  ;;  %v1857_v48 = vmul.u32.u64.low %v1818_v53, %v545_v41  ;;  %v1858_v50 = vmul.u32.u64.high %v1818_v53, %v545_v41, %v1857_v48 }
 0x10b   : > { %v940_v57 = vor.u32 %v939_v43, %v938_v39  ;;  %v942_v63 = vshrl.u32 %v1673_v2, %v933_v17  ;;  %v934_v1 = vshrl.u32 %v1670_v58, %v933_v17  ;;  %v944_v49 = vshll.u32 %v1673_v2, %v932_v61 }
 0x10c   : > { %v945_v3 = vshrl.u32 %v1674_v4, %v933_v17  ;;  %v948_v5 = vshrl.u32 %v1675_v11, %v933_v17  ;;  %v557_v6 = vmul.u32 %v1818_v53, %v541_v40  ;;  %v947_v8 = vshll.u32 %v1674_v4, %v932_v61 }
 0x10d   : > { %v943_v7 = vor.u32 %v942_v63, %v941_v59  ;;  %vm950_vm8 = vcmp.lt.s32.totalorder %v1829_v60, 1  ;;  %vm559_vm9 = vc.u32 %v1854_v46, %v1857_v48  ;;  %v560_v9 = vadd.s32 1, %v1858_v50 }
 0x10e   : > { %v946_v10 = vor.u32 %v945_v3, %v944_v49  ;;  %vm951_vm10 = vcmp.lt.s32.totalorder %v1829_v60, 2  ;;  %v949_v12 = vor.u32 %v948_v5, %v947_v8  ;;  %vm952_vm11 = vcmp.lt.s32.totalorder %v1829_v60, 3 }
 0x10f   : > { %vm953_vm12 = vcmp.lt.s32.totalorder %v1829_v60, 4  ;;  %v958_v13 = vsel %vm950_vm8, %v937_v51, %v940_v57  ;;  %v561_v53 = vsel %vm559_vm9, %v560_v9, %v1858_v50  ;;  %v962_v61 = vsel %vm950_vm8, %v940_v57, %v943_v7 }
 0x110   : > { %v955_v15 = vsel %vm953_vm12, %v943_v7, 2102212464  ;;  %v959_v16 = vsel %vm953_vm12, %v946_v10, 920167782  ;;  %v562_v17 = vadd.s32 %v561_v53, %v557_v6  ;;  %v954_v18 = vsel %vm950_vm8, %v934_v1, %v937_v51 }
 0x111   : > { %v960_v19 = vsel %vm952_vm11, %v943_v7, %v959_v16  ;;  %v963_v20 = vsel %vm953_vm12, %v949_v12, 1326507024  ;;  %v956_v21 = vsel %vm952_vm11, %v940_v57, %v955_v15  ;;  %v410_v32 = vsel %vm409_vm7, %v1826_v56, 0 }
 0x112   : > { %v961_v28 = vsel %vm951_vm10, %v958_v13, %v960_v19  ;;  %v964_v31 = vsel %vm952_vm11, %v946_v10, %v963_v20  ;;  %v563_v33 = vadd.s32 536870912, %v562_v17  ;;  %v957_v40 = vsel %vm951_vm10, %v954_v18, %v956_v21 }
 0x113   : > { %v965_v34 = vsel %vm951_vm10, %v962_v61, %v964_v31  ;;  %v1883_v35 = vmul.u32.u64.low %v1820_v54, %v961_v28  ;;  %v1884_v36 = vmul.u32.u64.high %v1820_v54, %v961_v28, %v1883_v35  ;;  %v412_v41 = vand.u32 31, %v410_v32 }
 0x114   : > { %v1888_v37 = vmul.u32.u64.low %v1820_v54, %v965_v34  ;;  %v1889_v38 = vmul.u32.u64.high %v1820_v54, %v965_v34, %v1888_v37  ;;  %v564_v39 = vshrl.u32 %v563_v33, 30  ;;  %v814_v56 = vand.u32 2147483647, %v1816_v52 }
 0x115   : > { %v406_v42 = vor.u32 8388608, %v1824_v55  ;;  %v817_v43 = vand.u32 2139095040, %v1816_v52  ;;  %v976_v50 = vadd.s32 1, %v1884_v36  ;;  %v413_v51 = vsub.s32 32, %v412_v41 }
 0x116   : > { %v565_v44 = vshll.u32 %v564_v39, 30  ;;  %v973_v60 = vmul.u32 %v1820_v54, %v957_v40  ;;  %vm975_vm15 = vc.u32 %v1889_v38, %v1883_v35  ;;  %v588_v59 = vsub.s32 4, %v564_v39 }
 0x117   : > { %v977_v63 = vsel %vm975_vm15, %v976_v50, %v1884_v36  ;;  %v1912_v1 = vand.u32 8388607, %v814_v56  ;;  %v416_v49 = vshrl.u32 %v1671_v62, %v413_v51  ;;  %v1915_v3 = vshll.u32 %v406_v42, 8 }
 0x118   : > { %v1907_v55 = vsub.s32 %v562_v17, %v565_v44  ;;  %v978_v27 = vadd.s32 %v977_v63, %v973_v60  ;;  %v818_v5 = vshrl.u32 %v817_v43, 23  ;;  %v558_v54 = vadd.s32 %v1857_v48, %v1854_v46 }
 0x119   : > { %v419_v7 = vshrl.u32 %v1672_v0, %v413_v51  ;;  %v422_v8 = vshrl.u32 %v1673_v2, %v413_v51  ;;  %v1921_v10 = vshrl.u32 %v410_v32, 5  ;;  %v415_v12 = vshll.u32 %v1670_v58, %v412_v41 }
 0x11a   : > { %v568_v6 = vsub.s32 0, %v1907_v55  ;;  %v979_v9 = vadd.s32 536870912, %v978_v27  ;;  %v418_v13 = vshll.u32 %v1671_v62, %v412_v41  ;;  %v589_v15 = vsel %vm504_vm14, %v588_v59, %v564_v39 }
 0x11b   : > { %v421_v46 = vshll.u32 %v1672_v0, %v412_v41  ;;  %v425_v48 = vshrl.u32 %v1674_v4, %v413_v51  ;;  %v417_v61 = vor.u32 %v416_v49, %v415_v12  ;;  %v424_v17 = vshll.u32 %v1673_v2, %v412_v41 }
 0x11c   : > { %v1382_v53 = vmin.u32 %v568_v6, %v1907_v55  ;;  %v1930_v16 = vshrl.u32 %v979_v9, 30  ;;  %v428_v18 = vshrl.u32 %v1675_v11, %v413_v51  ;;  %v420_v20 = vor.u32 %v419_v7, %v418_v13 }
 0x11d   : > { %v423_v21 = vor.u32 %v422_v8, %v421_v46  ;;  %v427_v28 = vshll.u32 %v1674_v4, %v412_v41  ;;  %v426_v32 = vor.u32 %v425_v48, %v424_v17  ;;  %vm430_vm0 = vcmp.lt.s32.totalorder %v1921_v10, 1 }
 0x11e   : > { %v570_v19 = vclz %v1382_v53  ;;  %v981_v31 = vshll.u32 %v1930_v16, 30  ;;  %v1393_v33 = vadd.s32 4294967169, %v818_v5  ;;  %v591_v36 = vsel %vm1899_vm13, 0, %v589_v15 }
 0x11f   : > { %v429_v37 = vor.u32 %v428_v18, %v427_v28  ;;  %vm433_vm1 = vcmp.lt.s32.totalorder %v1921_v10, 4  ;;  %vm431_vm2 = vcmp.lt.s32.totalorder %v1921_v10, 2  ;;  %vm432_vm3 = vcmp.lt.s32.totalorder %v1921_v10, 3 }
 0x120   : > { %v1383_v34 = vadd.s32 4294967294, %v570_v19  ;;  %v1940_v39 = vsub.s32 %v978_v27, %v981_v31  ;;  %v439_v40 = vsel %vm433_vm1, %v426_v32, 920167782  ;;  %v414_v41 = vshrl.u32 %v1670_v58, %v413_v51 }
 0x121   : > { %v438_v42 = vsel %vm430_vm0, %v417_v61, %v420_v20  ;;  %v440_v43 = vsel %vm432_vm3, %v423_v21, %v439_v40  ;;  %v595_v50 = vadd.s32 3, %v591_v36  ;;  %v442_v59 = vsel %vm430_vm0, %v420_v20, %v423_v21 }
 0x122   : > { %vm1384_vm4 = vcmp.lt.s32.totalorder %v1383_v34, 0  ;;  %v984_v60 = vsub.s32 0, %v1940_v39  ;;  %vm920_vm5 = vcmp.lt.s32.totalorder %v1793_v23, 0  ;;  %v435_v51 = vsel %vm433_vm1, %v423_v21, 2102212464 }
 0x123   : > { %v573_v44 = vsel %vm1384_vm4, 0, %v1383_v34  ;;  %v443_v49 = vsel %vm433_vm1, %v429_v37, 1326507024  ;;  %v441_v7 = vsel %vm431_vm2, %v438_v42, %v440_v43  ;;  %v824_v53 = vadd.s32 1, %v1393_v33 }
 0x124   : > { %v574_v63 = vsub.s32 32, %v573_v44  ;;  %v578_v27 = vsub.s32 4294967266, %v573_v44  ;;  %v575_v5 = vshll.u32 %v1907_v55, %v573_v44  ;;  %v1398_v6 = vmin.u32 %v984_v60, %v1940_v39 }
 0x125   : > { %v444_v8 = vsel %vm432_vm3, %v426_v32, %v443_v49  ;;  %v1004_v46 = vsub.s32 4, %v1930_v16  ;;  %v434_v55 = vsel %vm430_vm0, %v414_v41, %v417_v61  ;;  %v436_v48 = vsel %vm432_vm3, %v420_v20, %v435_v51 }
 0x126   : > { %v576_v9 = vshrl.u32 %v558_v54, %v574_v63  ;;  %v579_v12 = vadd.s32 127, %v578_v27  ;;  %v445_v13 = vsel %vm431_vm2, %v442_v59, %v444_v8  ;;  %v986_v15 = vclz %v1398_v6 }
 0x127   : > { %v1973_v19 = vmul.u32.u64.low %v1915_v3, %v445_v13  ;;  %v1974_v21 = vmul.u32.u64.high %v1915_v3, %v445_v13, %v1973_v19  ;;  %v1977_v28 = vmul.u32.u64.low %v1915_v3, %v441_v7  ;;  %v1978_v31 = vmul.u32.u64.high %v1915_v3, %v441_v7, %v1977_v28 }
 0x128   : > { %v577_v17 = vor.u32 %v576_v9, %v575_v5  ;;  %v580_v18 = vshll.u32 %v579_v12, 23  ;;  %v1399_v54 = vadd.s32 4294967294, %v986_v15  ;;  %vm825_vm6 = vcmp.gt.s32.totalorder %v824_v53, 0 }
 0x129   : > { %v974_v61 = vadd.s32 %v1883_v35, %v1889_v38  ;;  %v822_v33 = vor.u32 8388608, %v1912_v1  ;;  %v826_v20 = vsel %vm825_vm6, %v824_v53, 0  ;;  %v1984_v34 = vand.u32 3, %v595_v50 }
 0x12a   : > { %v581_v32 = vor.u32 4788187, %v580_v18  ;;  %vm1400_vm7 = vcmp.lt.s32.totalorder %v1399_v54, 0  ;;  %v437_v36 = vsel %vm431_vm2, %v434_v55, %v436_v48  ;;  %v828_v37 = vand.u32 31, %v826_v20 }
 0x12b   : > { %v584_v41 = vcvt.s32.f32 %v577_v17  ;;  %v989_v42 = vsel %vm1400_vm7, 0, %v1399_v54  ;;  %vm455_vm8 = vc.u32 %v1974_v21, %v1977_v28  ;;  %v1993_v35 = vsel %vm920_vm5, %v1004_v46, %v1930_v16 }
 0x12c   : > { %v582_v40 = vand.u32 2147483647, %v581_v32  ;;  %v990_v43 = vsub.s32 32, %v989_v42  ;;  %v994_v44 = vsub.s32 4294967266, %v989_v42  ;;  %v456_v38 = vadd.s32 1, %v1978_v31 }
 0x12d   : > { %v453_v10 = vmul.u32 %v1915_v3, %v437_v36  ;;  %v1997_v50 = vshrl.u32 %v826_v20, 5  ;;  %v829_v60 = vsub.s32 32, %v828_v37  ;;  %v991_v59 = vshll.u32 %v1940_v39, %v989_v42 }
 0x12e   : > { %v585_v1 = vmul.f32 %v584_v41, %v582_v40  ;;  %v992_v63 = vshrl.u32 %v974_v61, %v990_v43  ;;  %v995_v27 = vadd.s32 127, %v994_v44  ;;  %v457_v51 = vsel %vm455_vm8, %v456_v38, %v1978_v31 }
 0x12f   : > { %v458_v5 = vadd.s32 %v457_v51, %v453_v10  ;;  %v831_v6 = vshll.u32 %v1670_v58, %v828_v37  ;;  %v832_v16 = vshrl.u32 %v1671_v62, %v829_v60  ;;  %v834_v9 = vshll.u32 %v1671_v62, %v828_v37 }
 0x130   : > { %v586_v49 = vxor.u32 2147483648, %v585_v1  ;;  %v993_v7 = vor.u32 %v992_v63, %v991_v59  ;;  %v996_v8 = vshll.u32 %v995_v27, 23  ;;  %v835_v3 = vshrl.u32 %v1672_v0, %v829_v60 }
 0x131   : > { %v459_v39 = vadd.s32 536870912, %v458_v5  ;;  %v837_v13 = vshll.u32 %v1672_v0, %v828_v37  ;;  %v838_v53 = vshrl.u32 %v1673_v2, %v829_v60  ;;  %v833_v55 = vor.u32 %v832_v16, %v831_v6 }
 0x132   : > { %v587_v12 = vsel %vm504_vm14, %v586_v49, %v585_v1  ;;  %v997_v46 = vor.u32 4788187, %v996_v8  ;;  %v840_v48 = vshll.u32 %v1673_v2, %v828_v37  ;;  %v1000_v17 = vcvt.s32.f32 %v993_v7 }
 0x133   : > { %v590_v15 = vsel %vm1899_vm13, %v1791_v22, %v587_v12  ;;  %v2013_v18 = vshrl.u32 %v459_v39, 30  ;;  %v841_v19 = vshrl.u32 %v1674_v4, %v829_v60  ;;  %v836_v31 = vor.u32 %v835_v3, %v834_v9 }
 0x134   : > { %1557 = vcosq.f32 %v590_v15  ;;  %v998_v54 = vand.u32 2147483647, %v997_v46  ;;  %v844_v32 = vshrl.u32 %v1675_v11, %v829_v60  ;;  %vm2020_vm9 = vcmp.le.f32.partialorder %v918_v30, 0.7853982 }
 0x135   : > { %1559 = vsinq.f32 %v590_v15  ;;  %v461_v61 = vshll.u32 %v2013_v18, 30  ;;  %v842_v20 = vor.u32 %v841_v19, %v840_v48  ;;  %v839_v40 = vor.u32 %v838_v53, %v837_v13 }
 0x136   : > { %v1001_v36 = vmul.f32 %v1000_v17, %v998_v54  ;;  %v843_v41 = vshll.u32 %v1674_v4, %v828_v37  ;;  %vm601_vm10 = vcmp.eq.s32.totalorder %v1984_v34, 2  ;;  %v1007_v42 = vsel %vm2020_vm9, 0, %v1993_v35 }
 0x137   : > { %v2029_v43 = vsub.s32 %v458_v5, %v461_v61  ;;  %vm846_vm11 = vcmp.lt.s32.totalorder %v1997_v50, 1  ;;  %v2032_v44 = vshll.u32 %v822_v33, 8  ;;  %vm598_vm12 = vcmp.eq.s32.totalorder %v1984_v34, 0 }
 0x138   : > { %v1002_v30 = vxor.u32 2147483648, %v1001_v36  ;;  %v845_v38 = vor.u32 %v844_v32, %v843_v41  ;;  %vm849_vm13 = vcmp.lt.s32.totalorder %v1997_v50, 4  ;;  %v854_v37 = vsel %vm846_vm11, %v833_v55, %v836_v31 }
 0x139   : > { %vm597_vm14 = vcmp.lt.s32.totalorder %v1984_v34, 2  ;;  %v464_v1 = vsub.s32 0, %v2029_v43  ;;  %v830_v35 = vshrl.u32 %v1670_v58, %v829_v60  ;;  %vm848_vm15 = vcmp.lt.s32.totalorder %v1997_v50, 3 }
 0x13a   : > { %v855_v33 = vsel %vm849_vm13, %v842_v20, 920167782  ;;  %vm594_vm0 = vweird.f32 %v1791_v22  ;;  %v1003_v10 = vsel %vm920_vm5, %v1002_v30, %v1001_v36  ;;  %vm400_vm1 = vcmp.lt.s32.totalorder %v1795_v24, 0 }
 0x13b   : > { %vm847_vm2 = vcmp.lt.s32.totalorder %v1997_v50, 2  ;;  %v851_v59 = vsel %vm849_vm13, %v839_v40, 2102212464  ;;  %v856_v60 = vsel %vm848_vm15, %v839_v40, %v855_v33  ;;  %v1006_v63 = vsel %vm2020_vm9, %v1793_v23, %v1003_v10 }
 0x13c   : > { %v1378_v27 = vmin.u32 %v464_v1, %v2029_v43  ;;  %v857_v51 = vsel %vm847_vm2, %v854_v37, %v856_v60  ;;  %v858_v49 = vsel %vm846_vm11, %v836_v31, %v839_v40  ;;  %1561 = vcosq.f32 %v1006_v63 }
 0x13d   : > { %v859_v5 = vsel %vm849_vm13, %v845_v38, 1326507024  ;;  %v2064_v6 = vmul.u32.u64.low %v2032_v44, %v857_v51  ;;  %v2065_v16 = vmul.u32.u64.high %v2032_v44, %v857_v51, %v2064_v6  ;;  %1563 = vsinq.f32 %v1006_v63 }
 0x13e   : > { %v1558_v7 = vpop.eup %1557  ;;  %v466_v8 = vclz %v1378_v27  ;;  %v850_v9 = vsel %vm846_vm11, %v830_v35, %v833_v55  ;;  %v852_v3 = vsel %vm848_vm15, %v836_v31, %v851_v59  ;;  %v1011_v13 = vadd.s32 3, %v1007_v42 }
 0x13f   : > { %v1560_v12 = vpop.eup %1559  ;;  %v602_v39 = vxor.u32 2147483648, %v1558_v7  ;;  %v484_v53 = vsub.s32 4, %v2013_v18  ;;  %v860_v15 = vsel %vm848_vm15, %v842_v20, %v859_v5  ;;  %v367_v55 = vadd.f32 %v1797_v25, %v1786_v14 }
 0x140   : > { %v599_v46 = vxor.u32 2147483648, %v1560_v12  ;;  %v1379_v48 = vadd.s32 4294967294, %v466_v8  ;;  %v861_v17 = vsel %vm847_vm2, %v858_v49, %v860_v15  ;;  %v853_v54 = vsel %vm847_vm2, %v850_v9, %v852_v3 }
 0x141   : > { %v603_v19 = vsel %vm601_vm10, %v602_v39, %v1560_v12  ;;  %v2086_v31 = vmul.u32.u64.low %v2032_v44, %v861_v17  ;;  %v2087_v32 = vmul.u32.u64.high %v2032_v44, %v861_v17, %v2086_v31  ;;  %v872_v20 = vadd.s32 1, %v2065_v16 }
 0x142   : > { %v600_v61 = vsel %vm598_vm12, %v1558_v7, %v599_v46  ;;  %vm1380_vm3 = vcmp.lt.s32.totalorder %v1379_v48, 0  ;;  %v2092_v57 = vmul.f32 30.0, %v367_v55  ;;  %v1012_v36 = vand.u32 3, %v1011_v13 }
 0x143   : > { %v604_v25 = vsel %vm597_vm14, %v600_v61, %v603_v19  ;;  %v454_v50 = vadd.s32 %v1977_v28, %v1974_v21  ;;  %v469_v40 = vsel %vm1380_vm3, 0, %v1379_v48  ;;  %vm1010_vm4 = vweird.f32 %v1793_v23 }
 0x144   : > { %v605_v41 = vsel %vm594_vm0, nan, %v604_v25  ;;  %v470_v42 = vsub.s32 32, %v469_v40  ;;  %v474_v30 = vsub.s32 4294967266, %v469_v40  ;;  %v485_v38 = vsel %vm400_vm1, %v484_v53, %v2013_v18 }
 0x145   : > { %1231 = vst [vmem:[%s2104_s27 + $0x8] sm:$0xff] %v605_v41  ;;  %v471_v34 = vshll.u32 %v2029_v43, %v469_v40  ;;  %v869_v21 = vmul.u32 %v2032_v44, %v853_v54  ;;  %vm871_vm5 = vc.u32 %v2087_v32, %v2064_v6  ;;  %v710_v22 = vand.u32 2147483647, %v2092_v57 }
 0x146   : > { %v472_v28 = vshrl.u32 %v454_v50, %v470_v42  ;;  %v475_v37 = vadd.s32 127, %v474_v30  ;;  %v873_v1 = vsel %vm871_vm5, %v872_v20, %v2065_v16  ;;  %v713_v35 = vand.u32 2139095040, %v2092_v57  ;;  %v1562_v18 = vpop.eup %1561 }
 0x147   : > { %vm1014_vm6 = vcmp.eq.s32.totalorder %v1012_v36, 0  ;;  %vm2116_vm7 = vcmp.le.f32.partialorder %v398_v45, 0.7853982  ;;  %v874_v43 = vadd.s32 %v873_v1, %v869_v21  ;;  %v387_v44 = vadd.f32 %v1799_v26, %v1786_v14  ;;  %v1564_v10 = vpop.eup %1563 }
 0x148   : > { %v1018_v59 = vxor.u32 2147483648, %v1562_v18  ;;  %v473_v60 = vor.u32 %v472_v28, %v471_v34  ;;  %v476_v63 = vshll.u32 %v475_v37, 23  ;;  %v714_v27 = vshrl.u32 %v713_v35, 23 }
 0x149   : > { %v1015_v51 = vxor.u32 2147483648, %v1564_v10  ;;  %vm1017_vm8 = vcmp.eq.s32.totalorder %v1012_v36, 2  ;;  %v487_v49 = vsel %vm2116_vm7, 0, %v485_v38  ;;  %v875_v5 = vadd.s32 536870912, %v874_v43 }
 0x14a   : > { %v1019_v16 = vsel %vm1017_vm8, %v1018_v59, %v1564_v10  ;;  %v477_v45 = vor.u32 4788187, %v476_v63  ;;  %v1389_v7 = vadd.s32 4294967169, %v714_v27  ;;  %v717_v8 = vand.u32 8388607, %v710_v22 }
 0x14b   : > { %vm1013_vm9 = vcmp.lt.s32.totalorder %v1012_v36, 2  ;;  %v1016_v26 = vsel %vm1014_vm6, %v1562_v18, %v1015_v51  ;;  %v876_v9 = vshrl.u32 %v875_v5, 30  ;;  %v2127_v3 = vmul.f32 30.0, %v387_v44 }
 0x14c   : > { %v1020_v12 = vsel %vm1013_vm9, %v1016_v26, %v1019_v16  ;;  %v478_v39 = vand.u32 2147483647, %v477_v45  ;;  %v480_v13 = vcvt.s32.f32 %v473_v60  ;;  %v720_v53 = vadd.s32 1, %v1389_v7 }
 0x14d   : > { %v1021_v15 = vsel %vm1010_vm4, nan, %v1020_v12  ;;  %v491_v46 = vadd.s32 3, %v487_v49  ;;  %v877_v48 = vshll.u32 %v876_v9, 30  ;;  %v900_v17 = vsub.s32 4, %v876_v9 }
 0x14e   : > { %1235 = vst [vmem:[%s2104_s27 + $0x28] sm:$0xff] %v1021_v15  ;;  %v481_v55 = vmul.f32 %v480_v13, %v478_v39  ;;  %v718_v19 = vor.u32 8388608, %v717_v8  ;;  %vm721_vm10 = vcmp.gt.s32.totalorder %v720_v53, 0  ;;  %vm816_vm11 = vcmp.lt.s32.totalorder %v1816_v52, 0 }
 0x14f   : > { %v2133_v54 = vsub.s32 %v874_v43, %v877_v48  ;;  %v722_v31 = vsel %vm721_vm10, %v720_v53, 0  ;;  %v1126_v61 = vand.u32 2147483647, %v2127_v3  ;;  %v2138_v25 = vsel %vm816_vm11, %v900_v17, %v876_v9 }
 0x150   : > { %v482_v20 = vxor.u32 2147483648, %v481_v55  ;;  %v724_v23 = vand.u32 31, %v722_v31  ;;  %v2140_v36 = vand.u32 3, %v491_v46  ;;  %vm2144_vm12 = vcmp.le.f32.partialorder %v814_v56, 0.7853982 }
 0x151   : > { %v880_v40 = vsub.s32 0, %v2133_v54  ;;  %v1129_v41 = vand.u32 2139095040, %v2127_v3  ;;  %v870_v30 = vadd.s32 %v2064_v6, %v2087_v32  ;;  %v2154_v34 = vshll.u32 %v718_v19, 8 }
 0x152   : > { %v483_v42 = vsel %vm400_vm1, %v482_v20, %v481_v55  ;;  %v725_v38 = vsub.s32 32, %v724_v23  ;;  %v903_v28 = vsel %vm2144_vm12, 0, %v2138_v25  ;;  %v2165_v37 = vand.u32 8388607, %v1126_v61 }
 0x153   : > { %v486_v56 = vsel %vm2116_vm7, %v1795_v24, %v483_v42  ;;  %v1394_v21 = vmin.u32 %v880_v40, %v2133_v54  ;;  %v723_v1 = vshrl.u32 %v722_v31, 5  ;;  %v727_v18 = vshll.u32 %v1670_v58, %v724_v23 }
 0x154   : > { %1565 = vcosq.f32 %v486_v56  ;;  %v728_v6 = vshrl.u32 %v1671_v62, %v725_v38  ;;  %v731_v32 = vshrl.u32 %v1672_v0, %v725_v38  ;;  %v1130_v33 = vshrl.u32 %v1129_v41, 23 }
 0x155   : > { %1567 = vsinq.f32 %v486_v56  ;;  %v882_v35 = vclz %v1394_v21  ;;  %v726_v43 = vshrl.u32 %v1670_v58, %v725_v38  ;;  %v730_v44 = vshll.u32 %v1671_v62, %v724_v23 }
 0x156   : > { %v733_v10 = vshll.u32 %v1672_v0, %v724_v23  ;;  %v734_v59 = vshrl.u32 %v1673_v2, %v725_v38  ;;  %v729_v63 = vor.u32 %v728_v6, %v727_v18  ;;  %v736_v27 = vshll.u32 %v1673_v2, %v724_v23 }
 0x157   : > { %v1395_v60 = vadd.s32 4294967294, %v882_v35  ;;  %v737_v51 = vshrl.u32 %v1674_v4, %v725_v38  ;;  %vm497_vm13 = vcmp.eq.s32.totalorder %v2140_v36, 2  ;;  %v732_v49 = vor.u32 %v731_v32, %v730_v44 }
 0x158   : > { %v735_v5 = vor.u32 %v734_v59, %v733_v10  ;;  %v739_v16 = vshll.u32 %v1674_v4, %v724_v23  ;;  %v740_v45 = vshrl.u32 %v1675_v11, %v725_v38  ;;  %vm494_vm14 = vcmp.eq.s32.totalorder %v2140_v36, 0 }
 0x159   : > { %vm1396_vm15 = vcmp.lt.s32.totalorder %v1395_v60, 0  ;;  %v738_v7 = vor.u32 %v737_v51, %v736_v27  ;;  %vm742_vm0 = vcmp.lt.s32.totalorder %v723_v1, 1  ;;  %vm743_vm1 = vcmp.lt.s32.totalorder %v723_v1, 2 }
 0x15a   : > { %vm493_vm2 = vcmp.lt.s32.totalorder %v2140_v36, 2  ;;  %v885_v8 = vsel %vm1396_vm15, 0, %v1395_v60  ;;  %v741_v26 = vor.u32 %v740_v45, %v739_v16  ;;  %vm744_vm3 = vcmp.lt.s32.totalorder %v723_v1, 3 }
 0x15b   : > { %vm745_vm4 = vcmp.lt.s32.totalorder %v723_v1, 4  ;;  %vm490_vm5 = vweird.f32 %v1795_v24  ;;  %v886_v9 = vsub.s32 32, %v885_v8  ;;  %v890_v12 = vsub.s32 4294967266, %v885_v8 }
 0x15c   : > { %v746_v39 = vsel %vm742_vm0, %v726_v43, %v729_v63  ;;  %v747_v13 = vsel %vm745_vm4, %v735_v5, 2102212464  ;;  %v887_v53 = vshll.u32 %v2133_v54, %v885_v8  ;;  %v750_v15 = vsel %vm742_vm0, %v729_v63, %v732_v49 }
 0x15d   : > { %v751_v46 = vsel %vm745_vm4, %v738_v7, 920167782  ;;  %v754_v48 = vsel %vm742_vm0, %v732_v49, %v735_v5  ;;  %v888_v17 = vshrl.u32 %v870_v30, %v886_v9  ;;  %v891_v55 = vadd.s32 127, %v890_v12 }
 0x15e   : > { %v752_v19 = vsel %vm744_vm3, %v735_v5, %v751_v46  ;;  %v755_v31 = vsel %vm745_vm4, %v741_v26, 1326507024  ;;  %v1566_v20 = vpop.eup %1565  ;;  %v748_v25 = vsel %vm744_vm3, %v732_v49, %v747_v13  ;;  %v1405_v41 = vadd.s32 4294967169, %v1130_v33 }
 0x15f   : > { %v753_v23 = vsel %vm743_vm1, %v750_v15, %v752_v19  ;;  %v756_v40 = vsel %vm744_vm3, %v738_v7, %v755_v31  ;;  %v1568_v42 = vpop.eup %1567  ;;  %v498_v38 = vxor.u32 2147483648, %v1566_v20  ;;  %v889_v56 = vor.u32 %v888_v17, %v887_v53 }
 0x160   : > { %v892_v54 = vshll.u32 %v891_v55, 23  ;;  %v757_v21 = vsel %vm743_vm1, %v754_v48, %v756_v40  ;;  %v495_v6 = vxor.u32 2147483648, %v1568_v42  ;;  %v1136_v35 = vadd.s32 1, %v1405_v41 }
 0x161   : > { %v2189_v30 = vmul.u32.u64.low %v2154_v34, %v757_v21  ;;  %v2190_v32 = vmul.u32.u64.high %v2154_v34, %v757_v21, %v2189_v30  ;;  %v499_v18 = vsel %vm497_vm13, %v498_v38, %v1568_v42  ;;  %v907_v44 = vadd.s32 3, %v903_v28 }
 0x162   : > { %v893_v43 = vor.u32 4788187, %v892_v54  ;;  %v749_v33 = vsel %vm743_vm1, %v746_v39, %v748_v25  ;;  %v496_v10 = vsel %vm494_vm14, %v1566_v20, %v495_v6  ;;  %vm1137_vm6 = vcmp.gt.s32.totalorder %v1136_v35, 0 }
 0x163   : > { %v2198_v59 = vmul.u32.u64.low %v2154_v34, %v753_v23  ;;  %v2199_v60 = vmul.u32.u64.high %v2154_v34, %v753_v23, %v2198_v59  ;;  %v500_v63 = vsel %vm493_vm2, %v496_v10, %v499_v18  ;;  %v896_v51 = vcvt.s32.f32 %v889_v56 }
 0x164   : > { %v894_v27 = vand.u32 2147483647, %v893_v43  ;;  %v1138_v49 = vsel %vm1137_vm6, %v1136_v35, 0  ;;  %v501_v28 = vsel %vm490_vm5, nan, %v500_v63  ;;  %v362_v45 = vadd.f32 %v1786_v14, %v1803_v29 }
 0x165   : > { %v2206_v1 = vshrl.u32 %v1138_v49, 5  ;;  %1230 = vst [vmem:[%s2104_s27] sm:$0xff] %v501_v28  ;;  %vm767_vm7 = vc.u32 %v2190_v32, %v2198_v59  ;;  %v1140_v16 = vand.u32 31, %v1138_v49  ;;  %v2213_v7 = vand.u32 3, %v907_v44 }
 0x166   : > { %v897_v5 = vmul.f32 %v896_v51, %v894_v27  ;;  %v765_v36 = vmul.u32 %v2154_v34, %v749_v33  ;;  %v768_v8 = vadd.s32 1, %v2199_v60  ;;  %v1134_v24 = vor.u32 8388608, %v2165_v37 }
 0x167   : > { %v1141_v9 = vsub.s32 32, %v1140_v16  ;;  %v1143_v12 = vshll.u32 %v1670_v58, %v1140_v16  ;;  %vm1158_vm8 = vcmp.lt.s32.totalorder %v2206_v1, 1  ;;  %v1146_v13 = vshll.u32 %v1671_v62, %v1140_v16 }
 0x168   : > { %v898_v26 = vxor.u32 2147483648, %v897_v5  ;;  %v769_v39 = vsel %vm767_vm7, %v768_v8, %v2199_v60  ;;  %v1149_v14 = vshll.u32 %v1672_v0, %v1140_v16  ;;  %v1152_v29 = vshll.u32 %v1673_v2, %v1140_v16 }
 0x169   : > { %v770_v53 = vadd.s32 %v769_v39, %v765_v36  ;;  %v1144_v37 = vshrl.u32 %v1671_v62, %v1141_v9  ;;  %v1155_v15 = vshll.u32 %v1674_v4, %v1140_v16  ;;  %v1147_v48 = vshrl.u32 %v1672_v0, %v1141_v9 }
 0x16a   : > { %v899_v34 = vsel %vm816_vm11, %v898_v26, %v897_v5  ;;  %v1150_v17 = vshrl.u32 %v1673_v2, %v1141_v9  ;;  %v1153_v55 = vshrl.u32 %v1674_v4, %v1141_v9  ;;  %v1156_v20 = vshrl.u32 %v1675_v11, %v1141_v9 }
 0x16b   : > { %v902_v46 = vsel %vm2144_vm12, %v1816_v52, %v899_v34  ;;  %v771_v19 = vadd.s32 536870912, %v770_v53  ;;  %v1145_v31 = vor.u32 %v1144_v37, %v1143_v12  ;;  %v1148_v25 = vor.u32 %v1147_v48, %v1146_v13 }
 0x16c   : > { %1569 = vcosq.f32 %v902_v46  ;;  %v1151_v23 = vor.u32 %v1150_v17, %v1149_v14  ;;  %v1154_v40 = vor.u32 %v1153_v55, %v1152_v29  ;;  %v1157_v42 = vor.u32 %v1156_v20, %v1155_v15 }
 0x16d   : > { %1571 = vsinq.f32 %v902_v46  ;;  %v772_v41 = vshrl.u32 %v771_v19, 30  ;;  %vm1159_vm9 = vcmp.lt.s32.totalorder %v2206_v1, 2  ;;  %vm1161_vm10 = vcmp.lt.s32.totalorder %v2206_v1, 4 }
 0x16e   : > { %v1142_v50 = vshrl.u32 %v1670_v58, %v1141_v9  ;;  %vm1160_vm11 = vcmp.lt.s32.totalorder %v2206_v1, 3  ;;  %v1166_v38 = vsel %vm1158_vm8, %v1145_v31, %v1148_v25  ;;  %v1167_v56 = vsel %vm1161_vm10, %v1154_v40, 920167782 }
 0x16f   : > { %v773_v54 = vshll.u32 %v772_v41, 30  ;;  %v1163_v21 = vsel %vm1161_vm10, %v1151_v23, 2102212464  ;;  %v1168_v6 = vsel %vm1160_vm11, %v1151_v23, %v1167_v56  ;;  %v1170_v30 = vsel %vm1158_vm8, %v1148_v25, %v1151_v23 }
 0x170   : > { %v1169_v35 = vsel %vm1159_vm9, %v1166_v38, %v1168_v6  ;;  %v1171_v18 = vsel %vm1161_vm10, %v1157_v42, 1326507024  ;;  %v1174_v43 = vshll.u32 %v1134_v24, 8  ;;  %v2245_v44 = vmul.f32 30.0, %v362_v45  ;;  %v1589_v24 = vld [vmem:[%s2537_s2] ss:$0 sm:$0xff] }
 0x171   : > { %v2247_v33 = vsub.s32 %v770_v53, %v773_v54  ;;  %v796_v10 = vsub.s32 4, %v772_v41  ;;  %v1162_v60 = vsel %vm1158_vm8, %v1142_v50, %v1145_v31  ;;  %v1172_v63 = vsel %vm1160_vm11, %v1154_v40, %v1171_v18 }
 0x172   : > { %v1164_v27 = vsel %vm1160_vm11, %v1148_v25, %v1163_v21  ;;  %v1173_v51 = vsel %vm1159_vm9, %v1170_v30, %v1172_v63  ;;  %v2253_v49 = vmul.u32.u64.low %v1174_v43, %v1169_v35  ;;  %v2254_v28 = vmul.u32.u64.high %v1174_v43, %v1169_v35, %v2253_v49 }
 0x173   : > { %vm906_vm12 = vweird.f32 %v1816_v52  ;;  %v776_v5 = vsub.s32 0, %v2247_v33  ;;  %v2258_v16 = vmul.u32.u64.low %v1174_v43, %v1173_v51  ;;  %v2259_v45 = vmul.u32.u64.high %v1174_v43, %v1173_v51, %v2258_v16 }
 0x174   : > { %vm2263_vm13 = vcmp.le.f32.partialorder %v710_v22, 0.7853982  ;;  %vm712_vm14 = vcmp.lt.s32.totalorder %v2092_v57, 0  ;;  %v609_v8 = vand.u32 2139095040, %v2245_v44  ;;  %v382_v26 = vadd.f32 %v1589_v24, %v1814_v47 }
 0x175   : > { %vm909_vm15 = vcmp.lt.s32.totalorder %v2213_v7, 2  ;;  %v1390_v12 = vmin.u32 %v776_v5, %v2247_v33  ;;  %v797_v22 = vsel %vm712_vm14, %v796_v10, %v772_v41  ;;  %v1165_v39 = vsel %vm1159_vm9, %v1162_v60, %v1164_v27 }
 0x176   : > { %v1570_v9 = vpop.eup %1569  ;;  %v1184_v29 = vadd.s32 1, %v2254_v28  ;;  %v606_v34 = vand.u32 2147483647, %v2245_v44  ;;  %v610_v53 = vshrl.u32 %v609_v8, 23  ;;  %vm910_vm0 = vcmp.eq.s32.totalorder %v2213_v7, 0 }
 0x177   : > { %v1572_v13 = vpop.eup %1571  ;;  %v914_v14 = vxor.u32 2147483648, %v1570_v9  ;;  %vm913_vm1 = vcmp.eq.s32.totalorder %v2213_v7, 2  ;;  %v778_v37 = vclz %v1390_v12  ;;  %v799_v46 = vsel %vm2263_vm13, 0, %v797_v22 }
 0x178   : > { %v911_v47 = vxor.u32 2147483648, %v1572_v13  ;;  %v1181_v1 = vmul.u32 %v1174_v43, %v1165_v39  ;;  %vm1183_vm2 = vc.u32 %v2259_v45, %v2253_v49  ;;  %v1385_v19 = vadd.s32 4294967169, %v610_v53 }
 0x179   : > { %v915_v15 = vsel %vm913_vm1, %v914_v14, %v1572_v13  ;;  %v1391_v17 = vadd.s32 4294967294, %v778_v37  ;;  %v1185_v55 = vsel %vm1183_vm2, %v1184_v29, %v2254_v28  ;;  %v613_v25 = vand.u32 8388607, %v606_v34 }
 0x17a   : > { %v912_v48 = vsel %vm910_vm0, %v1570_v9, %v911_v47  ;;  %v1186_v20 = vadd.s32 %v1185_v55, %v1181_v1  ;;  %v2291_v23 = vmul.f32 30.0, %v382_v26  ;;  %v616_v41 = vadd.s32 1, %v1385_v19 }
 0x17b   : > { %v916_v31 = vsel %vm909_vm15, %v912_v48, %v915_v15  ;;  %vm1392_vm3 = vcmp.lt.s32.totalorder %v1391_v17, 0  ;;  %v766_v42 = vadd.s32 %v2198_v59, %v2190_v32  ;;  %v803_v54 = vadd.s32 3, %v799_v46 }
 0x17c   : > { %v917_v40 = vsel %vm906_vm12, nan, %v916_v31  ;;  %v781_v50 = vsel %vm1392_vm3, 0, %v1391_v17  ;;  %v1187_v38 = vadd.s32 536870912, %v1186_v20  ;;  %vm617_vm4 = vcmp.gt.s32.totalorder %v616_v41, 0 }
 0x17d   : > { %1234 = vst [vmem:[%s2104_s27 + $0x20] sm:$0xff] %v917_v40  ;;  %v782_v56 = vsub.s32 32, %v781_v50  ;;  %v786_v7 = vsub.s32 4294967266, %v781_v50  ;;  %v614_v6 = vor.u32 8388608, %v613_v25  ;;  %v618_v30 = vsel %vm617_vm4, %v616_v41, 0 }
 0x17e   : > { %v2298_v21 = vshrl.u32 %v1187_v38, 30  ;;  %v1025_v35 = vand.u32 2139095040, %v2291_v23  ;;  %v783_v52 = vshll.u32 %v2247_v33, %v781_v50  ;;  %v620_v10 = vand.u32 31, %v618_v30 }
 0x17f   : > { %v784_v18 = vshrl.u32 %v766_v42, %v782_v56  ;;  %v787_v43 = vadd.s32 127, %v786_v7  ;;  %v2303_v27 = vand.u32 3, %v803_v54  ;;  %v1182_v51 = vadd.s32 %v2253_v49, %v2259_v45 }
 0x180   : > { %v1189_v60 = vshll.u32 %v2298_v21, 30  ;;  %v621_v63 = vsub.s32 32, %v620_v10  ;;  %v2306_v16 = vshrl.u32 %v618_v30, 5  ;;  %v2308_v8 = vshll.u32 %v614_v6, 8 }
 0x181   : > { %v785_v32 = vor.u32 %v784_v18, %v783_v52  ;;  %v788_v59 = vshll.u32 %v787_v43, 23  ;;  %v1026_v24 = vshrl.u32 %v1025_v35, 23  ;;  %v629_v12 = vshll.u32 %v1672_v0, %v620_v10 }
 0x182   : > { %v1190_v28 = vsub.s32 %v1186_v20, %v1189_v60  ;;  %v624_v26 = vshrl.u32 %v1671_v62, %v621_v63  ;;  %v627_v9 = vshrl.u32 %v1672_v0, %v621_v63  ;;  %v630_v13 = vshrl.u32 %v1673_v2, %v621_v63 }
 0x183   : > { %v789_v5 = vor.u32 4788187, %v788_v59  ;;  %v792_v39 = vcvt.s32.f32 %v785_v32  ;;  %v633_v49 = vshrl.u32 %v1674_v4, %v621_v63  ;;  %v623_v14 = vshll.u32 %v1670_v58, %v620_v10 }
 0x184   : > { %v1192_v33 = vsub.s32 0, %v1190_v28  ;;  %v626_v29 = vshll.u32 %v1671_v62, %v620_v10  ;;  %v632_v53 = vshll.u32 %v1673_v2, %v620_v10  ;;  %v1212_v37 = vsub.s32 4, %v2298_v21 }
 0x185   : > { %v790_v22 = vand.u32 2147483647, %v789_v5  ;;  %v631_v15 = vor.u32 %v630_v13, %v629_v12  ;;  %v1401_v46 = vadd.s32 4294967169, %v1026_v24  ;;  %vm1128_vm5 = vcmp.lt.s32.totalorder %v2127_v3, 0 }
 0x186   : > { %v1406_v45 = vmin.u32 %v1192_v33, %v1190_v28  ;;  %v625_v48 = vor.u32 %v624_v26, %v623_v14  ;;  %v628_v17 = vor.u32 %v627_v9, %v626_v29  ;;  %v634_v55 = vor.u32 %v633_v49, %v632_v53 }
 0x187   : > { %v793_v47 = vmul.f32 %v792_v39, %v790_v22  ;;  %v622_v31 = vshrl.u32 %v1670_v58, %v621_v63  ;;  %v635_v20 = vshll.u32 %v1674_v4, %v620_v10  ;;  %v636_v25 = vshrl.u32 %v1675_v11, %v621_v63 }
 0x188   : > { %v1194_v1 = vclz %v1406_v45  ;;  %vm638_vm6 = vcmp.lt.s32.totalorder %v2306_v16, 1  ;;  %vm639_vm7 = vcmp.lt.s32.totalorder %v2306_v16, 2  ;;  %vm641_vm8 = vcmp.lt.s32.totalorder %v2306_v16, 4 }
 0x189   : > { %v794_v19 = vxor.u32 2147483648, %v793_v47  ;;  %v637_v42 = vor.u32 %v636_v25, %v635_v20  ;;  %vm640_vm9 = vcmp.lt.s32.totalorder %v2306_v16, 3  ;;  %v643_v50 = vsel %vm641_vm8, %v631_v15, 2102212464 }
 0x18a   : > { %v1407_v40 = vadd.s32 4294967294, %v1194_v1  ;;  %v646_v56 = vsel %vm638_vm6, %v625_v48, %v628_v17  ;;  %v647_v7 = vsel %vm641_vm8, %v634_v55, 920167782  ;;  %v642_v6 = vsel %vm638_vm6, %v622_v31, %v625_v48 }
 0x18b   : > { %v795_v41 = vsel %vm712_vm14, %v794_v19, %v793_v47  ;;  %v648_v30 = vsel %vm640_vm9, %v631_v15, %v647_v7  ;;  %v644_v36 = vsel %vm640_vm9, %v628_v17, %v643_v50  ;;  %v650_v10 = vsel %vm638_vm6, %v628_v17, %v631_v15 }
 0x18c   : > { %v798_v38 = vsel %vm2263_vm13, %v2092_v57, %v795_v41  ;;  %vm1408_vm10 = vcmp.lt.s32.totalorder %v1407_v40, 0  ;;  %v649_v43 = vsel %vm639_vm7, %v646_v56, %v648_v30  ;;  %v651_v60 = vsel %vm641_vm8, %v637_v42, 1326507024 }
 0x18d   : > { %1573 = vcosq.f32 %v798_v38  ;;  %v1197_v54 = vsel %vm1408_vm10, 0, %v1407_v40  ;;  %v652_v63 = vsel %vm640_vm9, %v634_v55, %v651_v60  ;;  %v1032_v5 = vadd.s32 1, %v1401_v46 }
 0x18e   : > { %1575 = vsinq.f32 %v798_v38  ;;  %v1198_v35 = vsub.s32 32, %v1197_v54  ;;  %v1202_v52 = vsub.s32 4294967266, %v1197_v54  ;;  %v1199_v18 = vshll.u32 %v1190_v28, %v1197_v54 }
 0x18f   : > { %v1213_v24 = vsel %vm1128_vm5, %v1212_v37, %v2298_v21  ;;  %v653_v28 = vsel %vm639_vm7, %v650_v10, %v652_v63  ;;  %v2358_v33 = vmul.u32.u64.low %v2308_v8, %v649_v43  ;;  %v2359_v26 = vmul.u32.u64.high %v2308_v8, %v649_v43, %v2358_v33 }
 0x190   : > { %v1200_v32 = vshrl.u32 %v1182_v51, %v1198_v35  ;;  %v1203_v59 = vadd.s32 127, %v1202_v52  ;;  %v2363_v51 = vmul.u32.u64.low %v2308_v8, %v653_v28  ;;  %v2364_v22 = vmul.u32.u64.high %v2308_v8, %v653_v28, %v2363_v51 }
 0x191   : > { %vm2368_vm11 = vcmp.le.f32.partialorder %v1126_v61, 0.7853982  ;;  %v645_v21 = vsel %vm639_vm7, %v642_v6, %v644_v36  ;;  %v1022_v13 = vand.u32 2147483647, %v2291_v23  ;;  %vm1033_vm12 = vcmp.gt.s32.totalorder %v1032_v5, 0 }
 0x192   : > { %v1201_v9 = vor.u32 %v1200_v32, %v1199_v18  ;;  %v1204_v12 = vshll.u32 %v1203_v59, 23  ;;  %vm802_vm13 = vweird.f32 %v2092_v57  ;;  %vm805_vm14 = vcmp.lt.s32.totalorder %v2303_v27, 2 }
 0x193   : > { %v1215_v45 = vsel %vm2368_vm11, 0, %v1213_v24  ;;  %v1034_v14 = vsel %vm1033_vm12, %v1032_v5, 0  ;;  %vm806_vm15 = vcmp.eq.s32.totalorder %v2303_v27, 0  ;;  %vm809_vm0 = vcmp.eq.s32.totalorder %v2303_v27, 2 }
 0x194   : > { %v1205_v49 = vor.u32 4788187, %v1204_v12  ;;  %v664_v61 = vadd.s32 1, %v2359_v26  ;;  %v1036_v16 = vand.u32 31, %v1034_v14  ;;  %v1208_v53 = vcvt.s32.f32 %v1201_v9 }
 0x195   : > { %v661_v47 = vmul.u32 %v2308_v8, %v645_v21  ;;  %vm663_vm1 = vc.u32 %v2364_v22, %v2358_v33  ;;  %v1219_v15 = vadd.s32 3, %v1215_v45  ;;  %v1029_v1 = vand.u32 8388607, %v1022_v13 }
 0x196   : > { %v1206_v29 = vand.u32 2147483647, %v1205_v49  ;;  %v665_v46 = vsel %vm663_vm1, %v664_v61, %v2359_v26  ;;  %v1037_v48 = vsub.s32 32, %v1036_v16  ;;  %v2388_v20 = vshrl.u32 %v1034_v14, 5 }
 0x197   : > { %v1574_v37 = vpop.eup %1573  ;;  %v666_v31 = vadd.s32 %v665_v46, %v661_v47  ;;  %v1039_v8 = vshll.u32 %v1670_v58, %v1036_v16  ;;  %v1042_v56 = vshll.u32 %v1671_v62, %v1036_v16  ;;  %v1045_v6 = vshll.u32 %v1672_v0, %v1036_v16 }
 0x198   : > { %v1576_v17 = vpop.eup %1575  ;;  %v810_v55 = vxor.u32 2147483648, %v1574_v37  ;;  %v1209_v19 = vmul.f32 %v1208_v53, %v1206_v29  ;;  %v1040_v40 = vshrl.u32 %v1671_v62, %v1037_v48  ;;  %v1043_v41 = vshrl.u32 %v1672_v0, %v1037_v48 }
 0x199   : > { %v807_v25 = vxor.u32 2147483648, %v1576_v17  ;;  %v667_v38 = vadd.s32 536870912, %v666_v31  ;;  %v1046_v30 = vshrl.u32 %v1673_v2, %v1037_v48  ;;  %v1048_v0 = vshll.u32 %v1673_v2, %v1036_v16 }
 0x19a   : > { %v811_v42 = vsel %vm809_vm0, %v810_v55, %v1576_v17  ;;  %v1210_v50 = vxor.u32 2147483648, %v1209_v19  ;;  %v1041_v54 = vor.u32 %v1040_v40, %v1039_v8  ;;  %v1044_v18 = vor.u32 %v1043_v41, %v1042_v56 }
 0x19b   : > { %v808_v7 = vsel %vm806_vm15, %v1574_v37, %v807_v25  ;;  %v2404_v36 = vshrl.u32 %v667_v38, 30  ;;  %v1049_v10 = vshrl.u32 %v1674_v4, %v1037_v48  ;;  %v1051_v60 = vshll.u32 %v1674_v4, %v1036_v16 }
 0x19c   : > { %v812_v35 = vsel %vm805_vm14, %v808_v7, %v811_v42  ;;  %v1211_v52 = vsel %vm1128_vm5, %v1210_v50, %v1209_v19  ;;  %v1052_v32 = vshrl.u32 %v1675_v11, %v1037_v48  ;;  %v1030_v59 = vor.u32 8388608, %v1029_v1 }
 0x19d   : > { %v813_v62 = vsel %vm802_vm13, nan, %v812_v35  ;;  %v1214_v43 = vsel %vm2368_vm11, %v2127_v3, %v1211_v52  ;;  %v669_v27 = vshll.u32 %v2404_v36, 30  ;;  %v1047_v57 = vor.u32 %v1046_v30, %v1045_v6 }
 0x19e   : > { %1233 = vst [vmem:[%s2104_s27 + $0x18] sm:$0xff] %v813_v62  ;;  %1577 = vcosq.f32 %v1214_v43  ;;  %v1050_v63 = vor.u32 %v1049_v10, %v1048_v0  ;;  %v1053_v24 = vor.u32 %v1052_v32, %v1051_v60  ;;  %vm1054_vm2 = vcmp.lt.s32.totalorder %v2388_v20, 1 }
 0x19f   : > { %1579 = vsinq.f32 %v1214_v43  ;;  %v670_v5 = vsub.s32 %v666_v31, %v669_v27  ;;  %vm1057_vm3 = vcmp.lt.s32.totalorder %v2388_v20, 4  ;;  %v1062_v2 = vsel %vm1054_vm2, %v1041_v54, %v1044_v18 }
 0x1a0   : > { %v1220_v28 = vand.u32 3, %v1219_v15  ;;  %vm1056_vm4 = vcmp.lt.s32.totalorder %v2388_v20, 3  ;;  %v1063_v4 = vsel %vm1057_vm3, %v1050_v63, 920167782  ;;  %vm1055_vm5 = vcmp.lt.s32.totalorder %v2388_v20, 2 }
 0x1a1   : > { %v672_v26 = vsub.s32 0, %v670_v5  ;;  %v1064_v11 = vsel %vm1056_vm4, %v1047_v57, %v1063_v4  ;;  %v1067_v9 = vsel %vm1057_vm3, %v1053_v24, 1326507024  ;;  %v1070_v12 = vshll.u32 %v1030_v59, 8 }
 0x1a2   : > { %v1059_v39 = vsel %vm1057_vm3, %v1047_v57, 2102212464  ;;  %v1065_v21 = vsel %vm1055_vm5, %v1062_v2, %v1064_v11  ;;  %v1066_v49 = vsel %vm1054_vm2, %v1044_v18, %v1047_v57  ;;  %v1038_v45 = vshrl.u32 %v1670_v58, %v1037_v48 }
 0x1a3   : > { %v1386_v51 = vmin.u32 %v672_v26, %v670_v5  ;;  %v1068_v14 = vsel %vm1056_vm4, %v1050_v63, %v1067_v9  ;;  %v2428_v61 = vmul.u32.u64.low %v1070_v12, %v1065_v21  ;;  %v2429_v16 = vmul.u32.u64.high %v1070_v12, %v1065_v21, %v2428_v61 }
 0x1a4   : > { %v1058_v53 = vsel %vm1054_vm2, %v1038_v45, %v1041_v54  ;;  %v1060_v47 = vsel %vm1056_vm4, %v1044_v18, %v1059_v39  ;;  %v1069_v37 = vsel %vm1055_vm5, %v1066_v49, %v1068_v14  ;;  %vm1218_vm6 = vweird.f32 %v2127_v3 }
 0x1a5   : > { %v674_v29 = vclz %v1386_v51  ;;  %v2436_v1 = vmul.u32.u64.low %v1070_v12, %v1069_v37  ;;  %v2437_v17 = vmul.u32.u64.high %v1070_v12, %v1069_v37, %v2436_v1  ;;  %vm1225_vm7 = vcmp.eq.s32.totalorder %v1220_v28, 2 }
 0x1a6   : > { %v1061_v19 = vsel %vm1055_vm5, %v1058_v53, %v1060_v47  ;;  %v1080_v31 = vadd.s32 1, %v2429_v16  ;;  %vm1221_vm9 = vcmp.lt.s32.totalorder %v1220_v28, 2  ;;  %vm1222_vm10 = vcmp.eq.s32.totalorder %v1220_v28, 0 }
 0x1a7   : > { %v1387_v46 = vadd.s32 4294967294, %v674_v29  ;;  %v662_v41 = vadd.s32 %v2358_v33, %v2364_v22  ;;  %v1077_v7 = vmul.u32 %v1070_v12, %v1061_v19  ;;  %vm1079_vm11 = vc.u32 %v2437_v17, %v2428_v61 }
 0x1a8   : > { %v1578_v15 = vpop.eup %1577  ;;  %v1081_v30 = vsel %vm1079_vm11, %v1080_v31, %v2429_v16  ;;  %v692_v60 = vsub.s32 4, %v2404_v36  ;;  %vm608_vm12 = vcmp.lt.s32.totalorder %v2245_v44, 0  ;;  %vm607_vm13 = vcmp.le.f32.partialorder %v606_v34, 0.7853982 }
 0x1a9   : > { %v1580_v55 = vpop.eup %1579  ;;  %v1226_v58 = vxor.u32 2147483648, %v1578_v15  ;;  %vm1388_vm8 = vcmp.lt.s32.totalorder %v1387_v46, 0  ;;  %v1082_v35 = vadd.s32 %v1081_v30, %v1077_v7  ;;  %v1078_v9 = vadd.s32 %v2428_v61, %v2437_v17 }
 0x1aa   : > { %v1223_v48 = vxor.u32 2147483648, %v1580_v55  ;;  %v677_v8 = vsel %vm1388_vm8, 0, %v1387_v46  ;;  %v693_v63 = vsel %vm608_vm12, %v692_v60, %v2404_v36  ;;  %vm698_vm2 = vweird.f32 %v2245_v44 }
 0x1ab   : > { %v1227_v25 = vsel %vm1225_vm7, %v1226_v58, %v1580_v55  ;;  %v678_v42 = vsub.s32 32, %v677_v8  ;;  %v682_v50 = vsub.s32 4294967266, %v677_v8  ;;  %v679_v56 = vshll.u32 %v670_v5, %v677_v8 }
 0x1ac   : > { %v1224_v40 = vsel %vm1222_vm10, %v1578_v15, %v1223_v48  ;;  %v1083_v33 = vadd.s32 536870912, %v1082_v35  ;;  %v695_v2 = vsel %vm607_vm13, 0, %v693_v63  ;;  %vm1024_vm3 = vcmp.lt.s32.totalorder %v2291_v23, 0 }
 0x1ad   : > { %v1228_v38 = vsel %vm1221_vm9, %v1224_v40, %v1227_v25  ;;  %v680_v54 = vshrl.u32 %v662_v41, %v678_v42  ;;  %v683_v6 = vadd.s32 127, %v682_v50  ;;  %v699_v4 = vadd.s32 3, %v695_v2 }
 0x1ae   : > { %v1229_v20 = vsel %vm1218_vm6, nan, %v1228_v38  ;;  %v1084_v62 = vshrl.u32 %v1083_v33, 30  ;;  %vm1023_vm4 = vcmp.le.f32.partialorder %v1022_v13, 0.7853982  ;;  %vm1114_vm8 = vweird.f32 %v2291_v23 }
 0x1af   : > { %1237 = vst [vmem:[%s2104_s27 + $0x38] sm:$0xff] %v1229_v20  ;;  %v681_v52 = vor.u32 %v680_v54, %v679_v56  ;;  %v684_v18 = vshll.u32 %v683_v6, 23  ;;  %v700_v34 = vand.u32 3, %v699_v4 }
 0x1b0   : > { %v1085_v10 = vshll.u32 %v1084_v62, 30  ;;  %v1108_v58 = vsub.s32 4, %v1084_v62 }
 0x1b1   : > { %v685_v22 = vor.u32 4788187, %v684_v18  ;;  %v688_v0 = vcvt.s32.f32 %v681_v52  ;;  %vm705_vm15 = vcmp.eq.s32.totalorder %v700_v34, 2  ;;  %vm702_vm0 = vcmp.eq.s32.totalorder %v700_v34, 0 }
 0x1b2   : > { %v1086_v32 = vsub.s32 %v1082_v35, %v1085_v10  ;;  %vm701_vm1 = vcmp.lt.s32.totalorder %v700_v34, 2  ;;  %v1109_v31 = vsel %vm1024_vm3, %v1108_v58, %v1084_v62 }
 0x1b3   : > { %v686_v43 = vand.u32 2147483647, %v685_v22  ;;  %v1111_v8 = vsel %vm1023_vm4, 0, %v1109_v31 }
 0x1b4   : > { %v1088_v59 = vsub.s32 0, %v1086_v32 }
 0x1b5   : > { %v689_v27 = vmul.f32 %v688_v0, %v686_v43 }
 0x1b6   : > { %v1402_v24 = vmin.u32 %v1088_v59, %v1086_v32 }
 0x1b7   : > { %v690_v3 = vxor.u32 2147483648, %v689_v27 }
 0x1b8   : > { %v1090_v28 = vclz %v1402_v24 }
 0x1b9   : > { %v691_v57 = vsel %vm608_vm12, %v690_v3, %v689_v27 }
 0x1ba   : > { %v694_v5 = vsel %vm607_vm13, %v2245_v44, %v691_v57  ;;  %v1403_v26 = vadd.s32 4294967294, %v1090_v28  ;;  %v1115_v44 = vadd.s32 3, %v1111_v8 }
 0x1bb   : > { %1581 = vcosq.f32 %v694_v5 }
 0x1bc   : > { %1583 = vsinq.f32 %v694_v5  ;;  %vm1404_vm14 = vcmp.lt.s32.totalorder %v1403_v26, 0  ;;  %v1116_v40 = vand.u32 3, %v1115_v44 }
 0x1bd   : > { %v1093_v11 = vsel %vm1404_vm14, 0, %v1403_v26 }
 0x1be   : > { %v1094_v12 = vsub.s32 32, %v1093_v11  ;;  %v1098_v51 = vsub.s32 4294967266, %v1093_v11  ;;  %v1095_v39 = vshll.u32 %v1086_v32, %v1093_v11  ;;  %vm1121_vm5 = vcmp.eq.s32.totalorder %v1116_v40, 2 }
 0x1bf   : > { %vm1118_vm6 = vcmp.eq.s32.totalorder %v1116_v40, 0  ;;  %vm1117_vm7 = vcmp.lt.s32.totalorder %v1116_v40, 2 }
 0x1c0   : > { %v1096_v21 = vshrl.u32 %v1078_v9, %v1094_v12  ;;  %v1099_v36 = vadd.s32 127, %v1098_v51 }
 0x1c2   : > { %v1097_v16 = vor.u32 %v1096_v21, %v1095_v39  ;;  %v1100_v29 = vshll.u32 %v1099_v36, 23 }
 0x1c4   : > { %v1101_v37 = vor.u32 4788187, %v1100_v29  ;;  %v1104_v1 = vcvt.s32.f32 %v1097_v16 }
 0x1c5   : > { %v1582_v49 = vpop.eup %1581 }
 0x1c6   : > { %v1584_v45 = vpop.eup %1583  ;;  %v706_v14 = vxor.u32 2147483648, %v1582_v49  ;;  %v1102_v46 = vand.u32 2147483647, %v1101_v37 }
 0x1c7   : > { %v703_v53 = vxor.u32 2147483648, %v1584_v45 }
 0x1c8   : > { %v707_v47 = vsel %vm705_vm15, %v706_v14, %v1584_v45  ;;  %v1105_v55 = vmul.f32 %v1104_v1, %v1102_v46 }
 0x1c9   : > { %v704_v15 = vsel %vm702_vm0, %v1582_v49, %v703_v53 }
 0x1ca   : > { %v708_v61 = vsel %vm701_vm1, %v704_v15, %v707_v47  ;;  %v1106_v48 = vxor.u32 2147483648, %v1105_v55 }
 0x1cb   : > { %v709_v17 = vsel %vm698_vm2, nan, %v708_v61 }
 0x1cc   : > { %1232 = vst [vmem:[%s2104_s27 + $0x10] sm:$0xff] %v709_v17  ;;  %v1107_v19 = vsel %vm1024_vm3, %v1106_v48, %v1105_v55 }
 0x1cd   : > { %v1110_v25 = vsel %vm1023_vm4, %v2291_v23, %v1107_v19 }
 0x1ce   : > { %1585 = vcosq.f32 %v1110_v25 }
 0x1cf   : > { %1587 = vsinq.f32 %v1110_v25 }
 0x1d8   : > { %v1586_v41 = vpop.eup %1585 }
 0x1d9   : > { %v1588_v42 = vpop.eup %1587  ;;  %v1122_v50 = vxor.u32 2147483648, %v1586_v41  ;;  %1245 = sbr.rel (!%p1739_p4) target bundleno = 508 (0x1fc), region = 36 }
 0x1da   : > { %v1119_v38 = vxor.u32 2147483648, %v1588_v42 }
 0x1db   : > { %v1123_v56 = vsel %vm1121_vm5, %v1122_v50, %v1588_v42 }
 0x1dc   : > { %v1120_v13 = vsel %vm1118_vm6, %v1586_v41, %v1119_v38 }
 0x1dd   : > { %v1124_v7 = vsel %vm1117_vm7, %v1120_v13, %v1123_v56 }
 0x1de   : > { %v1125_v20 = vsel %vm1114_vm8, nan, %v1124_v7 }
 0x1df   : > { %1236 = vst [vmem:[%s2104_s27 + $0x30] sm:$0xff] %v1125_v20 }
 0x1e0   : > { %s2561_s4 = smov (!%p1248_p12, %s1247_s4), 8 }
 0x1e1   : > { %s2474_s6 = sshll.u32 %s2561_s4, 7 }
 0x1e2   : > { %s1252_s7 = ssub.s32 1024, %s2474_s6 }
 0x1e3   : > { %1253 = vsyncadd %s2469_s30, %s1252_s7  ;;  %p1412_p13 = scmp.ne.s32.totalorder %s2474_s6, 0  ;;  %s1418_s8 = sshll.u32 %s1660_s15, 10 }
 0x1e4   : > { %s2483_s10 = scalar_lea.hbm %s2538_s3, %s1418_s8  ;;  %s1259_s5 = sshll.u32 %s2104_s27, 4  ;;  %s2486_s5 = int_to_ptr.vmem [resolvable:$true] %s1259_s5 }
 0x1e5   : > { %s1590_s11 = scalar_lea.vmem %s2486_s5, %s2474_s6  ;;  %s1676_s18 = smov [#allocation2]  }
 0x1e6   : > { %p1591_p0 = scmp.ne.s32.totalorder %s2486_s5, %s1590_s11  ;;  %s1594_s19 = sshll.u32 %s1676_s18, 4  ;;  %s1595_s19 = int_to_ptr.vmem [resolvable:$false] %s1594_s19 }
 0x1e7   : > { %s1596_s15 = scalar_lea.vmem %s1595_s19, 2048  ;;  %p1597_p3 = scmp.lt.s32.totalorder %s2486_s5, %s1595_s19 }
 0x1e8   : > { %p1592_p1 = pnand %p1591_p0, %p1412_p13  ;;  %p1598_p4 = scmp.lt.s32.totalorder %s1596_s15, %s1590_s11 }
 0x1ea   : > { %p1593_p2 = pneg %p1592_p1  ;;  %p1599_p5 = por %p1598_p4, %p1597_p3 }
 0x1ec   : > { %p1600_p6 = pnand %p1599_p5, %p1593_p2 }
 0x1ee   : > { %1603 = shalt.err (!%p1600_p6)
}
 0x1ef   : > { %s1604_s21 = scalar_lea.hbm %s2483_s10, %s2474_s6  ;;  %s1608_s27 = scalar_lea.hbm %s2538_s3, 2176 }
 0x1f0   : > { %p1605_p7 = scmp.ne.s32.totalorder %s2483_s10, %s1604_s21  ;;  %p1609_p11 = scmp.lt.u32.totalorder %s2483_s10, %s2538_s3 }
 0x1f1   : > { %p1610_p12 = scmp.lt.u32.totalorder %s1608_s27, %s1604_s21  ;;  %p1612_p1 = scmp.lt.u32.totalorder %s1604_s21, %s2483_s10 }
 0x1f2   : > { %p1606_p9 = pnand %p1605_p7, %p1412_p13 }
 0x1f3   : > { %p1611_p0 = por %p1610_p12, %p1609_p11 }
 0x1f4   : > { %p1607_p10 = pneg %p1606_p9 }
 0x1f5   : > { %p1613_p2 = por %p1612_p1, %p1611_p0 }
 0x1f7   : > { %p1614_p3 = pnand %p1613_p2, %p1607_p10 }
 0x1f9   : > { %1617 = shalt.err (!%p1614_p3)
}
 0x1fa   : > { %s1677_s4 = smov 128   ;;  %s1678_s7 = smov 8  }
 0x1fb   : > { %1265 = dma.vmem_to_hbm [thread:$0]  (%p1412_p13), %s2486_s5, %s2474_s6, %s2483_s10, %s2469_s30, %s1677_s4, %s1677_s4, %s1678_s7  }
 0x1fc PF: > { %p1500_p4 = scmp.ge.s32.totalorder %s1668_s17, 2  ;;  %s1274_s8 = sand.u32 1, %s1648_s12  }
 0x1fd   : > { %s1275_s9 = scalar_lea.sflag [#allocation3], %s1274_s8 }
 0x1fe   : > { %p1497_p5 = pnand %p1500_p4, %p1746_p8 }
 0x200   : > { %1643 = dma.done.wait (!%p1497_p5), %s1275_s9, 1024  }
 0x201   : > { %1645 = vsyncadd (!%p1497_p5), %s1275_s9, 4294966272  ;;  %s16_s17 = sadd.s32 1, %s1668_s17   ;;  %s2553_s12 = smov %s1652_s13 }
 0x202   : > { %p13_p6 = scmp.ge.s32.totalorder %s16_s17, 5   ;;  %s2554_s13 = smov %s1656_s14 }
 0x203   : > { %s2555_s14 = smov %s1752_s25  ;;  %s2556_s15 = smov %s1664_s16 }
 0x204   : > { %s2557_s16 = smov %s2559_s20  ;;  %15 = sbr.rel (!%p13_p6) target bundleno = 4 (0x4), region = 73 }
 0x20b   :  { %1280 = vsyncpa [#allocation3], 1 }
 0x20c   :  { %1282 = vsyncpa [#allocation3 + $0x1], 1 }

</bundles_post_ra>
